<compile_context>
chip_gen: v7x
topology: tpu7x:2x2x1
jax: 0.10.0
libtpu: 0.0.40
codegen_flags: <defaults>
</compile_context>

<pallas_src>
import math

import jax
import jax.numpy as jnp
import numpy as np
from jax import lax
from jax.experimental import pallas as pl
from jax.experimental.pallas import tpu as pltpu


_ACT_GAIN = {"linear": 1.0, "relu": math.sqrt(2.0), "lrelu": math.sqrt(2.0)}
_SUPPORTED_ACTS = ("linear", "relu", "lrelu")


def _round_up(x, m):
    return ((x + m - 1) // m) * m


def _largest_aligned_divisor(n, align, cap):
    """Largest d with d % align == 0, n % d == 0, d <= cap (n is a multiple of align)."""
    best = align
    d = align
    limit = min(n, cap)
    while d <= limit:
        if n % d == 0:
            best = d
        d += align
    return best


# ---------------------------------------------------------------------------
# Fused matmul + bias + activation kernel (FC layers)
# ---------------------------------------------------------------------------

def _make_matmul_kernel(*, activation, clamp, has_bias, post_gain):
    def kernel(*refs):
        if has_bias:
            x_ref, w_ref, b_ref, o_ref, acc_ref = refs
        else:
            x_ref, w_ref, o_ref, acc_ref = refs
            b_ref = None

        k = pl.program_id(2)

        @pl.when(k == 0)
        def _():
            acc_ref[...] = jnp.zeros_like(acc_ref)

        acc_ref[...] += jnp.dot(x_ref[...], w_ref[...],
                                preferred_element_type=jnp.float32)

        @pl.when(k == pl.num_programs(2) - 1)
        def _():
            y = acc_ref[...]
            if has_bias:
                y = y + b_ref[...]                   # (1, to) broadcasts over rows
            # sqrt(2) activation gain is folded into w/b (lrelu is positively homog.)
            if activation == "lrelu":
                y = jnp.where(y >= 0.0, y, jnp.float32(0.2) * y)
            elif activation == "relu":
                y = jnp.maximum(y, 0.0)
            if post_gain != 1.0:
                y = y * jnp.float32(post_gain)
            if clamp is not None:
                y = jnp.clip(y, -clamp, clamp)
            o_ref[...] = y.astype(o_ref.dtype)

    return kernel


def matmul_bias_act(x, w_prep, b_prep=None, *, activation="linear", clamp=None,
                    post_gain=1.0, out_dtype=jnp.float32,
                    tm_max=256, tk_max=2048, to_max=512):
    """y = act(x @ w_prep + b_prep) on the MXU (bf16 inputs, f32 accumulation).

    x      : [M, K]          activations (cast to bf16, zero-padded to [M_pad, K_pad])
    w_prep : [K_pad, O_pad]  pre-transposed bf16 weight, all gains folded, 128-padded
    b_prep : [1, O_pad] f32  (gains folded) or None

    Returns the PADDED [M_pad, O_pad] result; callers slice or keep it flowing padded.
    """
    if activation not in _SUPPORTED_ACTS:
        raise NotImplementedError(f"activation {activation!r} not supported")
    M, K = x.shape
    K_pad, O_pad = w_prep.shape
    assert K <= K_pad and K_pad % 128 == 0 and O_pad % 128 == 0

    tm = min(tm_max, _round_up(M, 16))
    M_pad = _round_up(M, tm)
    tk = _largest_aligned_divisor(K_pad, 128, tk_max)
    to = _largest_aligned_divisor(O_pad, 128, to_max)
    # Single row-block grids (small-batch FCs): split O so both v7x TensorCores get
    # work; the extra x pass is negligible at these row counts.  With >1 row blocks
    # keep O in one pass so x isn't re-streamed.
    if M_pad // tm == 1 and to == O_pad and O_pad > 128:
        to = _largest_aligned_divisor(O_pad, 128, O_pad // 2)

    x_p = x.astype(jnp.bfloat16)
    if (M_pad - M) or (K_pad - K):
        x_p = jnp.pad(x_p, ((0, M_pad - M), (0, K_pad - K)))

    has_bias = b_prep is not None
    operands = [x_p, w_prep]
    in_specs = [pl.BlockSpec((tm, tk), lambda i, j, k: (i, k)),
                pl.BlockSpec((tk, to), lambda i, j, k: (k, j))]
    if has_bias:
        operands.append(b_prep)
        in_specs.append(pl.BlockSpec((1, to), lambda i, j, k: (0, j)))

    n_m, n_o, n_k = M_pad // tm, O_pad // to, K_pad // tk
    grid = (n_m, n_o, n_k)

    out_isz = jnp.dtype(out_dtype).itemsize
    cost = pl.CostEstimate(
        flops=int(2 * M_pad * K_pad * O_pad),
        transcendentals=0,
        bytes_accessed=int(n_o * M_pad * K_pad * 2 + K_pad * O_pad * 2
                           + (O_pad * 4 if has_bias else 0) + M_pad * O_pad * out_isz))

    # live VMEM: double-buffered x/w/bias tiles + f32 accumulator + out tile
    live = (2 * tm * tk * 2 + 2 * tk * to * 2 + (2 * to * 4 if has_bias else 0)
            + tm * to * 4 + 2 * tm * to * out_isz)
    vmem_limit = int(min(max(2 * live + (2 << 20), 16 << 20), 64 << 20))

    kernel = _make_matmul_kernel(activation=activation, clamp=clamp,
                                 has_bias=has_bias, post_gain=post_gain)
    return pl.pallas_call(
        kernel,
        out_shape=jax.ShapeDtypeStruct((M_pad, O_pad), out_dtype),
        grid_spec=pltpu.PrefetchScalarGridSpec(
            num_scalar_prefetch=0,
            grid=grid,
            in_specs=in_specs,
            out_specs=pl.BlockSpec((tm, to), lambda i, j, k: (i, j)),
            scratch_shapes=[pltpu.VMEM((tm, to), jnp.float32)]),
        compiler_params=pltpu.CompilerParams(
            dimension_semantics=("parallel", "parallel", "arbitrary"),
            vmem_limit_bytes=vmem_limit),
        cost_estimate=cost,
    )(*operands)


# ---------------------------------------------------------------------------
# Channel-last conv kernel: kh*kw taps folded in-kernel (no im2col in HBM)
# ---------------------------------------------------------------------------

def _make_conv_tap_kernel(*, kh, kw, H, W, activation, clamp, post_gain, has_bias):
    def kernel(*refs):
        if has_bias:
            x_ref, w_ref, b_ref, o_ref = refs
        else:
            x_ref, w_ref, o_ref = refs
            b_ref = None
        C_pad = x_ref.shape[-1]
        O_pad = o_ref.shape[-1]

        acc = jnp.zeros((H * W, O_pad), jnp.float32)
        for dy in range(kh):
            for dx in range(kw):
                # dx was pre-shifted in the wrapper (leading dim), dy slices a
                # non-tiled leading dim -> no unaligned sublane offsets anywhere.
                xt = x_ref[0, dx, dy:dy + H, :, :].reshape(H * W, C_pad)
                acc = acc + jnp.dot(xt, w_ref[dy * kw + dx],
                                    preferred_element_type=jnp.float32)
        y = acc
        if has_bias:
            y = y + b_ref[...]
        if activation == "lrelu":
            y = jnp.where(y >= 0.0, y, jnp.float32(0.2) * y)
        elif activation == "relu":
            y = jnp.maximum(y, 0.0)
        if post_gain != 1.0:
            y = y * jnp.float32(post_gain)
        if clamp is not None:
            y = jnp.clip(y, -clamp, clamp)
        o_ref[0] = y.astype(o_ref.dtype)

    return kernel


def conv2d_taps_nhwc(x_shift, w_taps, b_prep, *, kh, activation="linear",
                     clamp=None, post_gain=1.0, out_dtype=jnp.bfloat16):
    """Stride-1 conv on a channel-last, channel/spatial padded, W-pre-shifted input.

    x_shift : [N, kw, H+kh-1, W, C_pad] bf16
    w_taps  : [kh*kw, C_pad, O_pad]     bf16, gains folded
    b_prep  : [1, O_pad] f32 or None
    Returns [N, H*W, O_pad] (channel-last, padded, spatial flattened).
    """
    if activation not in _SUPPORTED_ACTS:
        raise NotImplementedError(f"activation {activation!r} not supported")
    N, kw, Hp, W, C_pad = x_shift.shape
    T, C2, O_pad = w_taps.shape
    assert T == kh * kw and C2 == C_pad
    H = Hp - (kh - 1)

    has_bias = b_prep is not None
    operands = [x_shift, w_taps]
    in_specs = [pl.BlockSpec((1, kw, Hp, W, C_pad), lambda n: (n, 0, 0, 0, 0)),
                pl.BlockSpec((T, C_pad, O_pad), lambda n: (0, 0, 0))]
    if has_bias:
        operands.append(b_prep)
        in_specs.append(pl.BlockSpec((1, O_pad), lambda n: (0, 0)))

    out_isz = jnp.dtype(out_dtype).itemsize
    live = (2 * kw * Hp * W * C_pad * 2 + 2 * T * C_pad * O_pad * 2
            + (2 * O_pad * 4 if has_bias else 0)
            + H * W * O_pad * 4 + 2 * H * W * O_pad * out_isz)
    vmem_limit = int(min(max(2 * live + (2 << 20), 16 << 20), 64 << 20))

    kernel = _make_conv_tap_kernel(kh=kh, kw=kw, H=H, W=W, activation=activation,
                                   clamp=clamp, post_gain=post_gain, has_bias=has_bias)
    return pl.pallas_call(
        kernel,
        out_shape=jax.ShapeDtypeStruct((N, H * W, O_pad), out_dtype),
        grid_spec=pltpu.PrefetchScalarGridSpec(
            num_scalar_prefetch=0,
            grid=(N,),
            in_specs=in_specs,
            out_specs=pl.BlockSpec((1, H * W, O_pad), lambda n: (n, 0, 0))),
        compiler_params=pltpu.CompilerParams(
            dimension_semantics=("parallel",),
            vmem_limit_bytes=vmem_limit),
    )(*operands)


# ---------------------------------------------------------------------------
# Fused (out FC -> cmap projection) kernel
# ---------------------------------------------------------------------------

def _make_out_cmap_kernel(inv_sqrt_cmap, has_bias):
    def kernel(*refs):
        if has_bias:
            x_ref, w_ref, b_ref, c_ref, o_ref = refs
        else:
            x_ref, w_ref, c_ref, o_ref = refs
            b_ref = None
        y = jnp.dot(x_ref[...], w_ref[...], preferred_element_type=jnp.float32)
        if has_bias:
            y = y + b_ref[...]
        r = jnp.sum(y * c_ref[...], axis=1, keepdims=True) * jnp.float32(inv_sqrt_cmap)
        o_ref[...] = jnp.broadcast_to(r, o_ref.shape).astype(o_ref.dtype)

    return kernel


def out_cmap_fused(x_pad, w_prep, b_prep, cmap_pad, cmap_dim):
    """Fused linear FC + cmap projection: column 0 of the returned [M_pad, 128]
    f32 array holds sum((x @ w + b) * cmap, -1) / sqrt(cmap_dim)."""
    M_pad, F_pad = x_pad.shape
    F2, Cm_pad = w_prep.shape
    assert F2 == F_pad and cmap_pad.shape == (M_pad, Cm_pad)
    has_bias = b_prep is not None

    operands = [x_pad, w_prep] + ([b_prep] if has_bias else []) + [cmap_pad]
    in_specs = [pl.BlockSpec((M_pad, F_pad), lambda i: (0, 0)),
                pl.BlockSpec((F_pad, Cm_pad), lambda i: (0, 0))]
    if has_bias:
        in_specs.append(pl.BlockSpec((1, Cm_pad), lambda i: (0, 0)))
    in_specs.append(pl.BlockSpec((M_pad, Cm_pad), lambda i: (0, 0)))

    kernel = _make_out_cmap_kernel(1.0 / math.sqrt(cmap_dim), has_bias)
    return pl.pallas_call(
        kernel,
        out_shape=jax.ShapeDtypeStruct((M_pad, 128), jnp.float32),
        grid_spec=pltpu.PrefetchScalarGridSpec(
            num_scalar_prefetch=0,
            grid=(1,),
            in_specs=in_specs,
            out_specs=pl.BlockSpec((M_pad, 128), lambda i: (0, 0))),
        compiler_params=pltpu.CompilerParams(
            dimension_semantics=("arbitrary",),
            vmem_limit_bytes=32 * 1024 * 1024),
    )(*operands)


# ---------------------------------------------------------------------------
# Module-level wrappers mirroring the PyTorch classes
# ---------------------------------------------------------------------------

class FullyConnectedLayer:
    def __init__(self, in_features, out_features, bias=True, activation="linear",
                 lr_multiplier=1.0, bias_init=0.0, key=None, prepare=True):
        self.in_features = in_features
        self.out_features = out_features
        self.activation = activation
        key = jax.random.PRNGKey(0) if key is None else key
        self.weight = (jax.random.normal(key, (out_features, in_features),
                                         dtype=jnp.float32) / lr_multiplier)
        self.bias = (jnp.full((out_features,), float(bias_init), dtype=jnp.float32)
                     if bias else None)
        self.weight_gain = lr_multiplier / math.sqrt(in_features)
        self.bias_gain = lr_multiplier

        self.w_prep = None
        self.b_prep = None
        if prepare:
            # Fold gains (+ positively-homogeneous activation gain), transpose to
            # [K, O], pad to 128 multiples, cast to bf16 -- all ONCE at init.
            act_gain = _ACT_GAIN[activation]
            k_pad = _round_up(in_features, 128)
            o_pad = _round_up(out_features, 128)
            w = (self.weight * (self.weight_gain * act_gain)).T          # [K, O]
            self.w_prep = jnp.pad(w, ((0, k_pad - in_features),
                                      (0, o_pad - out_features))).astype(jnp.bfloat16)
            if bias:
                b = (self.bias * (self.bias_gain * act_gain)).reshape(1, -1)
                self.b_prep = jnp.pad(b, ((0, 0), (0, o_pad - out_features))
                                      ).astype(jnp.float32)

    def __call__(self, x):
        if self.w_prep is None:
            raise RuntimeError("layer was constructed with prepare=False")
        y = matmul_bias_act(x, self.w_prep, self.b_prep, activation=self.activation,
                            out_dtype=jnp.float32)
        return y[:x.shape[0], :self.out_features]


class Conv2dLayer:
    """up=down=1 path of the stylegan Conv2dLayer (all DiscriminatorEpilogue needs)."""
    # TODO(synk): up/down FIR resampling (conv2d_resample) not implemented; unused here.

    def __init__(self, in_channels, out_channels, kernel_size, bias=True,
                 activation="linear", conv_clamp=None, key=None):
        self.in_channels = in_channels
        self.out_channels = out_channels
        self.kernel_size = kernel_size
        self.activation = activation
        self.conv_clamp = conv_clamp
        self.padding = kernel_size // 2
        self.weight_gain = 1.0 / math.sqrt(in_channels * kernel_size ** 2)
        self.act_gain = _ACT_GAIN[activation]
        key = jax.random.PRNGKey(0) if key is None else key
        self.weight = jax.random.normal(
            key, (out_channels, in_channels, kernel_size, kernel_size), jnp.float32)
        self.bias = jnp.zeros((out_channels,), jnp.float32) if bias else None

        # Prepared per-tap weights for the channel-last kernel: [kh*kw, C_pad, O_pad]
        # bf16 with weight_gain and the lrelu sqrt(2) gain folded in -- once, at init.
        self.c_pad = _round_up(in_channels, 128)
        self.o_pad = _round_up(out_channels, 128)
        w = self.weight * (self.weight_gain * self.act_gain)         # [O, C, kh, kw]
        w = jnp.transpose(w, (2, 3, 1, 0))                            # [kh, kw, C, O]
        w = jnp.pad(w, ((0, 0), (0, 0), (0, self.c_pad - in_channels),
                        (0, self.o_pad - out_channels)))
        self.w_prep = w.reshape(kernel_size * kernel_size, self.c_pad,
                                self.o_pad).astype(jnp.bfloat16)
        self.b_prep = None
        if bias:
            b = (self.bias * self.act_gain).reshape(1, -1)
            self.b_prep = jnp.pad(b, ((0, 0), (0, self.o_pad - out_channels))
                                  ).astype(jnp.float32)

    def __call__(self, x_nchw, gain=1.0, out_layout="nchw"):
        N, C, H, W = x_nchw.shape
        assert C == self.in_channels
        p = self.padding
        ks = self.kernel_size
        # Single NCHW->NHWC transpose (bf16), channel + spatial zero padding.
        x = jnp.transpose(x_nchw.astype(jnp.bfloat16), (0, 2, 3, 1))
        x = jnp.pad(x, ((0, 0), (p, p), (p, p), (0, self.c_pad - C)))
        # Pre-shift along W only (kw copies of a tiny tensor) so the kernel's tap
        # slices never touch an unaligned sublane offset; dy stays in-kernel (free).
        x = jnp.stack([x[:, :, dx:dx + W, :] for dx in range(ks)], axis=1)

        clamp = self.conv_clamp * gain if self.conv_clamp is not None else None
        out_dtype = jnp.bfloat16 if out_layout == "nhwc_padded" else jnp.float32
        y = conv2d_taps_nhwc(x, self.w_prep, self.b_prep, kh=ks,
                             activation=self.activation, clamp=clamp,
                             post_gain=float(gain), out_dtype=out_dtype)  # [N,H*W,O_pad]
        if out_layout == "nhwc_padded":
            return y
        y = y.reshape(N, H, W, self.o_pad)[..., :self.out_channels]
        return jnp.transpose(y, (0, 3, 1, 2))


class MinibatchStdLayer:
    # Tiny per-batch statistics; plain JAX reductions (no benefit from a custom kernel).
    def __init__(self, group_size, num_channels=1):
        self.group_size = group_size
        self.num_channels = num_channels

    def __call__(self, x):
        N, C, H, W = x.shape
        G = N if self.group_size is None else min(self.group_size, N)
        F = self.num_channels
        c = C // F
        y = x.reshape(G, -1, F, c, H, W)
        y = y - y.mean(axis=0)
        y = jnp.square(y).mean(axis=0)
        y = jnp.sqrt(y + 1e-8)
        y = y.mean(axis=(2, 3, 4))                 # [N//G, F]
        y = y.reshape(-1, F, 1, 1)
        y = jnp.tile(y, (G, 1, H, W))
        return jnp.concatenate([x, y], axis=1)


class DiscriminatorEpilogue:
    def __init__(self, in_channels, cmap_dim, resolution, img_channels,
                 architecture="resnet", mbstd_group_size=4, mbstd_num_channels=1,
                 activation="lrelu", conv_clamp=None, key=None):
        assert architecture in ("orig", "skip", "resnet")
        self.in_channels = in_channels
        self.cmap_dim = cmap_dim
        self.resolution_h, self.resolution_w = resolution
        self.img_channels = img_channels
        self.architecture = architecture
        key = jax.random.PRNGKey(0) if key is None else key
        k0, k1, k2, k3 = jax.random.split(key, 4)
        if architecture == "skip":
            self.fromrgb = Conv2dLayer(img_channels, in_channels, kernel_size=1,
                                       activation=activation, key=k0)
        self.mbstd = (MinibatchStdLayer(mbstd_group_size, mbstd_num_channels)
                      if mbstd_num_channels > 0 else None)
        self.conv = Conv2dLayer(in_channels + mbstd_num_channels, in_channels,
                                kernel_size=3, activation=activation,
                                conv_clamp=conv_clamp, key=k1)
        H, W = self.resolution_h, self.resolution_w
        self.fc = FullyConnectedLayer(in_channels * H * W, in_channels,
                                      activation=activation, key=k2, prepare=False)
        self.out = FullyConnectedLayer(in_channels, 1 if cmap_dim == 0 else cmap_dim,
                                       key=k3)

        # fc weight, pre-permuted / pre-padded ONCE so it consumes the conv kernel's
        # channel-last, channel-padded bf16 output directly (columns in (h,w,c) order).
        act_gain = _ACT_GAIN[activation]
        c_conv = in_channels                         # conv output channels
        cpad = self.conv.o_pad                       # conv output channel padding
        fpad = _round_up(in_channels, 128)
        wfc = self.fc.weight * (self.fc.weight_gain * act_gain)       # [F, C*H*W]
        wfc = wfc.reshape(in_channels, c_conv, H, W)                   # [F, C, H, W]
        wfc = jnp.transpose(wfc, (2, 3, 1, 0))                         # [H, W, C, F]
        wfc = jnp.pad(wfc, ((0, 0), (0, 0), (0, cpad - c_conv),
                            (0, fpad - in_channels)))
        self.fc_w_prep = wfc.reshape(H * W * cpad, fpad).astype(jnp.bfloat16)
        bfc = (self.fc.bias * (self.fc.bias_gain * act_gain)).reshape(1, -1)
        self.fc_b_prep = jnp.pad(bfc, ((0, 0), (0, fpad - in_channels))
                                 ).astype(jnp.float32)

    def __call__(self, x, img, cmap):
        N = x.shape[0]
        x = x.astype(jnp.float32)
        if self.architecture == "skip":
            x = x + self.fromrgb(img.astype(jnp.float32))
        if self.mbstd is not None:
            x = self.mbstd(x)
        # 3x3 conv + lrelu: channel-last tap kernel; output stays padded bf16.
        y = self.conv(x, out_layout="nhwc_padded")             # [N, H*W, C_pad] bf16
        y = y.reshape(N, -1)                                    # free (contiguous)
        # FC + lrelu with the pre-permuted / pre-padded weight; keep padded bf16.
        y = matmul_bias_act(y, self.fc_w_prep, self.fc_b_prep,
                            activation=self.fc.activation,
                            out_dtype=jnp.bfloat16)             # [M_pad, F_pad] bf16
        if self.cmap_dim > 0:
            m_pad = y.shape[0]
            cm_pad = self.out.w_prep.shape[1]
            cm = jnp.pad(cmap.astype(jnp.float32),
                         ((0, m_pad - N), (0, cm_pad - self.cmap_dim)))
            z = out_cmap_fused(y, self.out.w_prep, self.out.b_prep, cm, self.cmap_dim)
            return z[:N, :1]
        z = matmul_bias_act(y, self.out.w_prep, self.out.b_prep,
                            activation=self.out.activation, out_dtype=jnp.float32)
        return z[:N, :1]


# ---------------------------------------------------------------------------
# Pure-JAX float32 reference (mirrors the PyTorch module semantics exactly)
# ---------------------------------------------------------------------------

def _ref_fc(layer, x):
    w = layer.weight.astype(jnp.float32) * layer.weight_gain
    y = x @ w.T
    if layer.bias is not None:
        y = y + layer.bias * layer.bias_gain
    if layer.activation == "lrelu":
        y = jnp.where(y >= 0, y, 0.2 * y) * math.sqrt(2.0)
    elif layer.activation == "relu":
        y = jnp.maximum(y, 0.0) * math.sqrt(2.0)
    return y


def _ref_conv(layer, x, gain=1.0):
    w = layer.weight.astype(jnp.float32) * layer.weight_gain
    y = lax.conv_general_dilated(
        x, w, window_strides=(1, 1),
        padding=[(layer.padding, layer.padding)] * 2,
        dimension_numbers=("NCHW", "OIHW", "NCHW"))
    if layer.bias is not None:
        y = y + layer.bias.reshape(1, -1, 1, 1)
    if layer.activation == "lrelu":
        y = jnp.where(y >= 0, y, 0.2 * y)
    elif layer.activation == "relu":
        y = jnp.maximum(y, 0.0)
    y = y * (layer.act_gain * gain)
    if layer.conv_clamp is not None:
        c = layer.conv_clamp * gain
        y = jnp.clip(y, -c, c)
    return y


def _reference_epilogue(model, x, img, cmap):
    x = x.astype(jnp.float32)
    if model.architecture == "skip":
        x = x + _ref_conv(model.fromrgb, img.astype(jnp.float32))
    if model.mbstd is not None:
        x = model.mbstd(x)
    x = _ref_conv(model.conv, x)
    x = _ref_fc(model.fc, x.reshape(x.shape[0], -1))
    x = _ref_fc(model.out, x)
    if model.cmap_dim > 0:
        x = jnp.sum(x * cmap, axis=1, keepdims=True) * (1.0 / math.sqrt(model.cmap_dim))
    return x


if __name__ == "__main__":
    key = jax.random.PRNGKey(0)
    k_model, kx, kc = jax.random.split(key, 3)

    N, C, H, W = 2, 4, 16, 16
    CMAP = 8
    model = DiscriminatorEpilogue(
        in_channels=C, cmap_dim=CMAP, resolution=(H, W), img_channels=3,
        architecture="resnet", mbstd_group_size=4, mbstd_num_channels=1,
        activation="lrelu", conv_clamp=None, key=k_model)

    x = jax.random.normal(kx, (N, C, H, W), dtype=jnp.float32)
    cmap = jax.random.normal(kc, (N, CMAP), dtype=jnp.float32)

    fwd = jax.jit(lambda xx, cc: model(xx, None, cc))
    y = fwd(x, cmap)
    jax.block_until_ready(y)
    assert y.shape == (N, 1) and y.dtype == jnp.float32

    # Loose tolerance: kernels use bf16 MXU operands, reference is pure f32.
    y_ref = _reference_epilogue(model, x, None, cmap)
    np.testing.assert_allclose(np.asarray(y), np.asarray(y_ref), rtol=0.1, atol=0.1)

    print("KERNEL_OK")
</pallas_src>

<mosaic_0001>
module attributes {stable_mosaic.version = 11 : i64} {
  func.func @kernel(%arg0: i32, %arg1: memref<1x3x18x16x128xbf16, #tpu.memory_space<vmem>>, %arg2: memref<9x128x128xbf16, #tpu.memory_space<vmem>>, %arg3: memref<1x128xf32, #tpu.memory_space<vmem>>, %arg4: memref<1x256x128xbf16, #tpu.memory_space<vmem>>) attributes {dimension_semantics = [#tpu.dimension_semantics<parallel>], iteration_bounds = array<i64: 2>, scalar_prefetch = 0 : i64, scratch_operands = 0 : i64, tpu.core_type = #tpu.core_type<tc>, window_params = [{transform_indices = @transform_0, window_bounds = array<i64: 1, 3, 18, 16, 128>}, {pipeline_mode = #tpu.pipeline_mode<synchronous>, transform_indices = @transform_1, window_bounds = array<i64: 9, 128, 128>}, {pipeline_mode = #tpu.pipeline_mode<synchronous>, transform_indices = @transform_2, window_bounds = array<i64: 1, 128>}, {transform_indices = @transform_3, window_bounds = array<i64: 1, 256, 128>}]} {
    %cst = arith.constant 0.000000e+00 : f32
    %0 = vector.broadcast %cst : f32 to vector<256x128xf32>
    %c0 = arith.constant 0 : index
    %c0_0 = arith.constant 0 : index
    %c0_1 = arith.constant 0 : index
    %c0_2 = arith.constant 0 : index
    %c0_3 = arith.constant 0 : index
    %1 = vector.load %arg1[%c0, %c0_0, %c0_1, %c0_2, %c0_3] : memref<1x3x18x16x128xbf16, #tpu.memory_space<vmem>>, vector<1x1x16x16x128xbf16>
    %2 = vector.shape_cast %1 : vector<1x1x16x16x128xbf16> to vector<16x16x128xbf16>
    %3 = vector.shape_cast %2 : vector<16x16x128xbf16> to vector<256x128xbf16>
    %c0_4 = arith.constant 0 : index
    %c0_5 = arith.constant 0 : index
    %c0_6 = arith.constant 0 : index
    %4 = vector.load %arg2[%c0_4, %c0_5, %c0_6] : memref<9x128x128xbf16, #tpu.memory_space<vmem>>, vector<1x128x128xbf16>
    %5 = vector.shape_cast %4 : vector<1x128x128xbf16> to vector<128x128xbf16>
    %cst_7 = arith.constant dense<0.000000e+00> : vector<256x128xf32>
    %6 = tpu.matmul %3, %5, %cst_7 {dimension_numbers = #tpu.dot_dimension_numbers<[1], [0], [0], [1], [0, 0, 1, 1], [], []>} : vector<256x128xbf16>, vector<128x128xbf16>, vector<256x128xf32> -> vector<256x128xf32>
    %7 = arith.addf %0, %6 : vector<256x128xf32>
    %c0_8 = arith.constant 0 : index
    %c1 = arith.constant 1 : index
    %c0_9 = arith.constant 0 : index
    %c0_10 = arith.constant 0 : index
    %c0_11 = arith.constant 0 : index
    %8 = vector.load %arg1[%c0_8, %c1, %c0_9, %c0_10, %c0_11] : memref<1x3x18x16x128xbf16, #tpu.memory_space<vmem>>, vector<1x1x16x16x128xbf16>
    %9 = vector.shape_cast %8 : vector<1x1x16x16x128xbf16> to vector<16x16x128xbf16>
    %10 = vector.shape_cast %9 : vector<16x16x128xbf16> to vector<256x128xbf16>
    %c1_12 = arith.constant 1 : index
    %c0_13 = arith.constant 0 : index
    %c0_14 = arith.constant 0 : index
    %11 = vector.load %arg2[%c1_12, %c0_13, %c0_14] : memref<9x128x128xbf16, #tpu.memory_space<vmem>>, vector<1x128x128xbf16>
    %12 = vector.shape_cast %11 : vector<1x128x128xbf16> to vector<128x128xbf16>
    %cst_15 = arith.constant dense<0.000000e+00> : vector<256x128xf32>
    %13 = tpu.matmul %10, %12, %cst_15 {dimension_numbers = #tpu.dot_dimension_numbers<[1], [0], [0], [1], [0, 0, 1, 1], [], []>} : vector<256x128xbf16>, vector<128x128xbf16>, vector<256x128xf32> -> vector<256x128xf32>
    %14 = arith.addf %7, %13 : vector<256x128xf32>
    %c0_16 = arith.constant 0 : index
    %c2 = arith.constant 2 : index
    %c0_17 = arith.constant 0 : index
    %c0_18 = arith.constant 0 : index
    %c0_19 = arith.constant 0 : index
    %15 = vector.load %arg1[%c0_16, %c2, %c0_17, %c0_18, %c0_19] : memref<1x3x18x16x128xbf16, #tpu.memory_space<vmem>>, vector<1x1x16x16x128xbf16>
    %16 = vector.shape_cast %15 : vector<1x1x16x16x128xbf16> to vector<16x16x128xbf16>
    %17 = vector.shape_cast %16 : vector<16x16x128xbf16> to vector<256x128xbf16>
    %c2_20 = arith.constant 2 : index
    %c0_21 = arith.constant 0 : index
    %c0_22 = arith.constant 0 : index
    %18 = vector.load %arg2[%c2_20, %c0_21, %c0_22] : memref<9x128x128xbf16, #tpu.memory_space<vmem>>, vector<1x128x128xbf16>
    %19 = vector.shape_cast %18 : vector<1x128x128xbf16> to vector<128x128xbf16>
    %cst_23 = arith.constant dense<0.000000e+00> : vector<256x128xf32>
    %20 = tpu.matmul %17, %19, %cst_23 {dimension_numbers = #tpu.dot_dimension_numbers<[1], [0], [0], [1], [0, 0, 1, 1], [], []>} : vector<256x128xbf16>, vector<128x128xbf16>, vector<256x128xf32> -> vector<256x128xf32>
    %21 = arith.addf %14, %20 : vector<256x128xf32>
    %c0_24 = arith.constant 0 : index
    %c0_25 = arith.constant 0 : index
    %c1_26 = arith.constant 1 : index
    %c0_27 = arith.constant 0 : index
    %c0_28 = arith.constant 0 : index
    %22 = vector.load %arg1[%c0_24, %c0_25, %c1_26, %c0_27, %c0_28] : memref<1x3x18x16x128xbf16, #tpu.memory_space<vmem>>, vector<1x1x16x16x128xbf16>
    %23 = vector.shape_cast %22 : vector<1x1x16x16x128xbf16> to vector<16x16x128xbf16>
    %24 = vector.shape_cast %23 : vector<16x16x128xbf16> to vector<256x128xbf16>
    %c3 = arith.constant 3 : index
    %c0_29 = arith.constant 0 : index
    %c0_30 = arith.constant 0 : index
    %25 = vector.load %arg2[%c3, %c0_29, %c0_30] : memref<9x128x128xbf16, #tpu.memory_space<vmem>>, vector<1x128x128xbf16>
    %26 = vector.shape_cast %25 : vector<1x128x128xbf16> to vector<128x128xbf16>
    %cst_31 = arith.constant dense<0.000000e+00> : vector<256x128xf32>
    %27 = tpu.matmul %24, %26, %cst_31 {dimension_numbers = #tpu.dot_dimension_numbers<[1], [0], [0], [1], [0, 0, 1, 1], [], []>} : vector<256x128xbf16>, vector<128x128xbf16>, vector<256x128xf32> -> vector<256x128xf32>
    %28 = arith.addf %21, %27 : vector<256x128xf32>
    %c0_32 = arith.constant 0 : index
    %c1_33 = arith.constant 1 : index
    %c1_34 = arith.constant 1 : index
    %c0_35 = arith.constant 0 : index
    %c0_36 = arith.constant 0 : index
    %29 = vector.load %arg1[%c0_32, %c1_33, %c1_34, %c0_35, %c0_36] : memref<1x3x18x16x128xbf16, #tpu.memory_space<vmem>>, vector<1x1x16x16x128xbf16>
    %30 = vector.shape_cast %29 : vector<1x1x16x16x128xbf16> to vector<16x16x128xbf16>
    %31 = vector.shape_cast %30 : vector<16x16x128xbf16> to vector<256x128xbf16>
    %c4 = arith.constant 4 : index
    %c0_37 = arith.constant 0 : index
    %c0_38 = arith.constant 0 : index
    %32 = vector.load %arg2[%c4, %c0_37, %c0_38] : memref<9x128x128xbf16, #tpu.memory_space<vmem>>, vector<1x128x128xbf16>
    %33 = vector.shape_cast %32 : vector<1x128x128xbf16> to vector<128x128xbf16>
    %cst_39 = arith.constant dense<0.000000e+00> : vector<256x128xf32>
    %34 = tpu.matmul %31, %33, %cst_39 {dimension_numbers = #tpu.dot_dimension_numbers<[1], [0], [0], [1], [0, 0, 1, 1], [], []>} : vector<256x128xbf16>, vector<128x128xbf16>, vector<256x128xf32> -> vector<256x128xf32>
    %35 = arith.addf %28, %34 : vector<256x128xf32>
    %c0_40 = arith.constant 0 : index
    %c2_41 = arith.constant 2 : index
    %c1_42 = arith.constant 1 : index
    %c0_43 = arith.constant 0 : index
    %c0_44 = arith.constant 0 : index
    %36 = vector.load %arg1[%c0_40, %c2_41, %c1_42, %c0_43, %c0_44] : memref<1x3x18x16x128xbf16, #tpu.memory_space<vmem>>, vector<1x1x16x16x128xbf16>
    %37 = vector.shape_cast %36 : vector<1x1x16x16x128xbf16> to vector<16x16x128xbf16>
    %38 = vector.shape_cast %37 : vector<16x16x128xbf16> to vector<256x128xbf16>
    %c5 = arith.constant 5 : index
    %c0_45 = arith.constant 0 : index
    %c0_46 = arith.constant 0 : index
    %39 = vector.load %arg2[%c5, %c0_45, %c0_46] : memref<9x128x128xbf16, #tpu.memory_space<vmem>>, vector<1x128x128xbf16>
    %40 = vector.shape_cast %39 : vector<1x128x128xbf16> to vector<128x128xbf16>
    %cst_47 = arith.constant dense<0.000000e+00> : vector<256x128xf32>
    %41 = tpu.matmul %38, %40, %cst_47 {dimension_numbers = #tpu.dot_dimension_numbers<[1], [0], [0], [1], [0, 0, 1, 1], [], []>} : vector<256x128xbf16>, vector<128x128xbf16>, vector<256x128xf32> -> vector<256x128xf32>
    %42 = arith.addf %35, %41 : vector<256x128xf32>
    %c0_48 = arith.constant 0 : index
    %c0_49 = arith.constant 0 : index
    %c2_50 = arith.constant 2 : index
    %c0_51 = arith.constant 0 : index
    %c0_52 = arith.constant 0 : index
    %43 = vector.load %arg1[%c0_48, %c0_49, %c2_50, %c0_51, %c0_52] : memref<1x3x18x16x128xbf16, #tpu.memory_space<vmem>>, vector<1x1x16x16x128xbf16>
    %44 = vector.shape_cast %43 : vector<1x1x16x16x128xbf16> to vector<16x16x128xbf16>
    %45 = vector.shape_cast %44 : vector<16x16x128xbf16> to vector<256x128xbf16>
    %c6 = arith.constant 6 : index
    %c0_53 = arith.constant 0 : index
    %c0_54 = arith.constant 0 : index
    %46 = vector.load %arg2[%c6, %c0_53, %c0_54] : memref<9x128x128xbf16, #tpu.memory_space<vmem>>, vector<1x128x128xbf16>
    %47 = vector.shape_cast %46 : vector<1x128x128xbf16> to vector<128x128xbf16>
    %cst_55 = arith.constant dense<0.000000e+00> : vector<256x128xf32>
    %48 = tpu.matmul %45, %47, %cst_55 {dimension_numbers = #tpu.dot_dimension_numbers<[1], [0], [0], [1], [0, 0, 1, 1], [], []>} : vector<256x128xbf16>, vector<128x128xbf16>, vector<256x128xf32> -> vector<256x128xf32>
    %49 = arith.addf %42, %48 : vector<256x128xf32>
    %c0_56 = arith.constant 0 : index
    %c1_57 = arith.constant 1 : index
    %c2_58 = arith.constant 2 : index
    %c0_59 = arith.constant 0 : index
    %c0_60 = arith.constant 0 : index
    %50 = vector.load %arg1[%c0_56, %c1_57, %c2_58, %c0_59, %c0_60] : memref<1x3x18x16x128xbf16, #tpu.memory_space<vmem>>, vector<1x1x16x16x128xbf16>
    %51 = vector.shape_cast %50 : vector<1x1x16x16x128xbf16> to vector<16x16x128xbf16>
    %52 = vector.shape_cast %51 : vector<16x16x128xbf16> to vector<256x128xbf16>
    %c7 = arith.constant 7 : index
    %c0_61 = arith.constant 0 : index
    %c0_62 = arith.constant 0 : index
    %53 = vector.load %arg2[%c7, %c0_61, %c0_62] : memref<9x128x128xbf16, #tpu.memory_space<vmem>>, vector<1x128x128xbf16>
    %54 = vector.shape_cast %53 : vector<1x128x128xbf16> to vector<128x128xbf16>
    %cst_63 = arith.constant dense<0.000000e+00> : vector<256x128xf32>
    %55 = tpu.matmul %52, %54, %cst_63 {dimension_numbers = #tpu.dot_dimension_numbers<[1], [0], [0], [1], [0, 0, 1, 1], [], []>} : vector<256x128xbf16>, vector<128x128xbf16>, vector<256x128xf32> -> vector<256x128xf32>
    %56 = arith.addf %49, %55 : vector<256x128xf32>
    %c0_64 = arith.constant 0 : index
    %c2_65 = arith.constant 2 : index
    %c2_66 = arith.constant 2 : index
    %c0_67 = arith.constant 0 : index
    %c0_68 = arith.constant 0 : index
    %57 = vector.load %arg1[%c0_64, %c2_65, %c2_66, %c0_67, %c0_68] : memref<1x3x18x16x128xbf16, #tpu.memory_space<vmem>>, vector<1x1x16x16x128xbf16>
    %58 = vector.shape_cast %57 : vector<1x1x16x16x128xbf16> to vector<16x16x128xbf16>
    %59 = vector.shape_cast %58 : vector<16x16x128xbf16> to vector<256x128xbf16>
    %c8 = arith.constant 8 : index
    %c0_69 = arith.constant 0 : index
    %c0_70 = arith.constant 0 : index
    %60 = vector.load %arg2[%c8, %c0_69, %c0_70] : memref<9x128x128xbf16, #tpu.memory_space<vmem>>, vector<1x128x128xbf16>
    %61 = vector.shape_cast %60 : vector<1x128x128xbf16> to vector<128x128xbf16>
    %cst_71 = arith.constant dense<0.000000e+00> : vector<256x128xf32>
    %62 = tpu.matmul %59, %61, %cst_71 {dimension_numbers = #tpu.dot_dimension_numbers<[1], [0], [0], [1], [0, 0, 1, 1], [], []>} : vector<256x128xbf16>, vector<128x128xbf16>, vector<256x128xf32> -> vector<256x128xf32>
    %63 = arith.addf %56, %62 : vector<256x128xf32>
    %c0_72 = arith.constant 0 : index
    %c0_73 = arith.constant 0 : index
    %64 = vector.load %arg3[%c0_72, %c0_73] : memref<1x128xf32, #tpu.memory_space<vmem>>, vector<1x128xf32>
    %65 = vector.broadcast %64 : vector<1x128xf32> to vector<256x128xf32>
    %66 = arith.addf %63, %65 : vector<256x128xf32>
    %cst_74 = arith.constant 0.000000e+00 : f32
    %67 = vector.broadcast %cst_74 : f32 to vector<256x128xf32>
    %68 = arith.cmpf oge, %66, %67 : vector<256x128xf32>
    %cst_75 = arith.constant 2.000000e-01 : f32
    %69 = vector.broadcast %cst_75 : f32 to vector<256x128xf32>
    %70 = arith.mulf %69, %66 : vector<256x128xf32>
    %71 = arith.select %68, %66, %70 : vector<256x128xi1>, vector<256x128xf32>
    %72 = arith.truncf %71 : vector<256x128xf32> to vector<256x128xbf16>
    %c0_76 = arith.constant 0 : index
    %c0_77 = arith.constant 0 : index
    %c0_78 = arith.constant 0 : index
    %73 = vector.load %arg4[%c0_76, %c0_77, %c0_78] : memref<1x256x128xbf16, #tpu.memory_space<vmem>>, vector<1x256x128xbf16>
    %74 = vector.shape_cast %73 : vector<1x256x128xbf16> to vector<256x128xbf16>
    %75 = vector.shape_cast %72 : vector<256x128xbf16> to vector<1x256x128xbf16>
    tpu.vector_store %arg4[%c0_76, %c0_77, %c0_78], %75 {strides = array<i32>} : memref<1x256x128xbf16, #tpu.memory_space<vmem>>, vector<1x256x128xbf16>,
    return
  }
  func.func @transform_0(%arg0: i32) -> (i32, i32, i32, i32, i32) {
    %c0_i32 = arith.constant 0 : i32
    %c0_i32_0 = arith.constant 0 : i32
    %c0_i32_1 = arith.constant 0 : i32
    %c0_i32_2 = arith.constant 0 : i32
    %c0_i32_3 = arith.constant 0 : i32
    return %arg0, %c0_i32, %c0_i32_0, %c0_i32_1, %c0_i32_2 : i32, i32, i32, i32, i32
  }
  func.func @transform_1(%arg0: i32) -> (i32, i32, i32) {
    %c0_i32 = arith.constant 0 : i32
    %c0_i32_0 = arith.constant 0 : i32
    %c0_i32_1 = arith.constant 0 : i32
    %c0_i32_2 = arith.constant 0 : i32
    return %c0_i32, %c0_i32_0, %c0_i32_1 : i32, i32, i32
  }
  func.func @transform_2(%arg0: i32) -> (i32, i32) {
    %c0_i32 = arith.constant 0 : i32
    %c0_i32_0 = arith.constant 0 : i32
    %c0_i32_1 = arith.constant 0 : i32
    return %c0_i32, %c0_i32_0 : i32, i32
  }
  func.func @transform_3(%arg0: i32) -> (i32, i32, i32) {
    %c0_i32 = arith.constant 0 : i32
    %c0_i32_0 = arith.constant 0 : i32
    %c0_i32_1 = arith.constant 0 : i32
    return %arg0, %c0_i32, %c0_i32_0 : i32, i32, i32
  }
}

module attributes {stable_mosaic.version = 11 : i64} {
  func.func @kernel(%arg0: i32, %arg1: i32, %arg2: i32, %arg3: memref<16x2048xbf16, #tpu.memory_space<vmem>>, %arg4: memref<2048x128xbf16, #tpu.memory_space<vmem>>, %arg5: memref<1x128xf32, #tpu.memory_space<vmem>>, %arg6: memref<16x128xbf16, #tpu.memory_space<vmem>>, %arg7: memref<16x128xf32, #tpu.memory_space<vmem>>) attributes {dimension_semantics = [#tpu.dimension_semantics<parallel>, #tpu.dimension_semantics<parallel>, #tpu.dimension_semantics<arbitrary>], iteration_bounds = array<i64: 1, 1, 16>, scalar_prefetch = 0 : i64, scratch_operands = 1 : i64, tpu.core_type = #tpu.core_type<tc>, window_params = [{transform_indices = @transform_0, window_bounds = array<i64: 16, 2048>}, {transform_indices = @transform_1, window_bounds = array<i64: 2048, 128>}, {transform_indices = @transform_2, window_bounds = array<i64: 1, 128>}, {transform_indices = @transform_3, window_bounds = array<i64: 16, 128>}]} {
    %c0_i32 = arith.constant 0 : i32
    %0 = arith.cmpi eq, %arg2, %c0_i32 : i32
    %1 = arith.extui %0 : i1 to i32
    %c0_i32_0 = arith.constant 0 : i32
    %2 = arith.cmpi ne, %1, %c0_i32_0 : i32
    scf.if %2 {
      %cst_9 = arith.constant 0.000000e+00 : f32
      %12 = vector.broadcast %cst_9 : f32 to vector<16x128xf32>
      %c0_10 = arith.constant 0 : index
      %c0_11 = arith.constant 0 : index
      %13 = vector.load %arg7[%c0_10, %c0_11] : memref<16x128xf32, #tpu.memory_space<vmem>>, vector<16x128xf32>
      tpu.vector_store %arg7[%c0_10, %c0_11], %12 {strides = array<i32>} : memref<16x128xf32, #tpu.memory_space<vmem>>, vector<16x128xf32>,
    } else {
    }
    %c0 = arith.constant 0 : index
    %c0_1 = arith.constant 0 : index
    %3 = vector.load %arg7[%c0, %c0_1] : memref<16x128xf32, #tpu.memory_space<vmem>>, vector<16x128xf32>
    %c0_2 = arith.constant 0 : index
    %c0_3 = arith.constant 0 : index
    %4 = vector.load %arg3[%c0_2, %c0_3] : memref<16x2048xbf16, #tpu.memory_space<vmem>>, vector<16x2048xbf16>
    %c0_4 = arith.constant 0 : index
    %c0_5 = arith.constant 0 : index
    %5 = vector.load %arg4[%c0_4, %c0_5] : memref<2048x128xbf16, #tpu.memory_space<vmem>>, vector<2048x128xbf16>
    %cst = arith.constant dense<0.000000e+00> : vector<16x128xf32>
    %6 = tpu.matmul %4, %5, %cst {dimension_numbers = #tpu.dot_dimension_numbers<[1], [0], [0], [1], [0, 0, 1, 1], [], []>} : vector<16x2048xbf16>, vector<2048x128xbf16>, vector<16x128xf32> -> vector<16x128xf32>
    %7 = arith.addf %3, %6 : vector<16x128xf32>
    %c0_6 = arith.constant 0 : index
    %c0_7 = arith.constant 0 : index
    %8 = vector.load %arg7[%c0_6, %c0_7] : memref<16x128xf32, #tpu.memory_space<vmem>>, vector<16x128xf32>
    tpu.vector_store %arg7[%c0_6, %c0_7], %7 {strides = array<i32>} : memref<16x128xf32, #tpu.memory_space<vmem>>, vector<16x128xf32>,
    %c15_i32 = arith.constant 15 : i32
    %9 = arith.cmpi eq, %arg2, %c15_i32 : i32
    %10 = arith.extui %9 : i1 to i32
    %c0_i32_8 = arith.constant 0 : i32
    %11 = arith.cmpi ne, %10, %c0_i32_8 : i32
    scf.if %11 {
      %c0_9 = arith.constant 0 : index
      %c0_10 = arith.constant 0 : index
      %12 = vector.load %arg7[%c0_9, %c0_10] : memref<16x128xf32, #tpu.memory_space<vmem>>, vector<16x128xf32>
      %c0_11 = arith.constant 0 : index
      %c0_12 = arith.constant 0 : index
      %13 = vector.load %arg5[%c0_11, %c0_12] : memref<1x128xf32, #tpu.memory_space<vmem>>, vector<1x128xf32>
      %14 = vector.broadcast %13 : vector<1x128xf32> to vector<16x128xf32>
      %15 = arith.addf %12, %14 : vector<16x128xf32>
      %cst_13 = arith.constant 0.000000e+00 : f32
      %16 = vector.broadcast %cst_13 : f32 to vector<16x128xf32>
      %17 = arith.cmpf oge, %15, %16 : vector<16x128xf32>
      %cst_14 = arith.constant 2.000000e-01 : f32
      %18 = vector.broadcast %cst_14 : f32 to vector<16x128xf32>
      %19 = arith.mulf %18, %15 : vector<16x128xf32>
      %20 = arith.select %17, %15, %19 : vector<16x128xi1>, vector<16x128xf32>
      %21 = arith.truncf %20 : vector<16x128xf32> to vector<16x128xbf16>
      %c0_15 = arith.constant 0 : index
      %c0_16 = arith.constant 0 : index
      %22 = vector.load %arg6[%c0_15, %c0_16] : memref<16x128xbf16, #tpu.memory_space<vmem>>, vector<16x128xbf16>
      tpu.vector_store %arg6[%c0_15, %c0_16], %21 {strides = array<i32>} : memref<16x128xbf16, #tpu.memory_space<vmem>>, vector<16x128xbf16>,
    } else {
    }
    return
  }
  func.func @transform_0(%arg0: i32, %arg1: i32, %arg2: i32) -> (i32, i32) {
    %c0_i32 = arith.constant 0 : i32
    return %arg0, %arg2 : i32, i32
  }
  func.func @transform_1(%arg0: i32, %arg1: i32, %arg2: i32) -> (i32, i32) {
    %c0_i32 = arith.constant 0 : i32
    return %arg2, %arg1 : i32, i32
  }
  func.func @transform_2(%arg0: i32, %arg1: i32, %arg2: i32) -> (i32, i32) {
    %c0_i32 = arith.constant 0 : i32
    %c0_i32_0 = arith.constant 0 : i32
    return %c0_i32, %arg1 : i32, i32
  }
  func.func @transform_3(%arg0: i32, %arg1: i32, %arg2: i32) -> (i32, i32) {
    %c0_i32 = arith.constant 0 : i32
    return %arg0, %arg1 : i32, i32
  }
}

module attributes {stable_mosaic.version = 11 : i64} {
  func.func @kernel(%arg0: i32, %arg1: memref<16x128xbf16, #tpu.memory_space<vmem>>, %arg2: memref<128x128xbf16, #tpu.memory_space<vmem>>, %arg3: memref<1x128xf32, #tpu.memory_space<vmem>>, %arg4: memref<16x128xf32, #tpu.memory_space<vmem>>, %arg5: memref<16x128xf32, #tpu.memory_space<vmem>>) attributes {dimension_semantics = [#tpu.dimension_semantics<arbitrary>], iteration_bounds = array<i64: 1>, scalar_prefetch = 0 : i64, scratch_operands = 0 : i64, tpu.core_type = #tpu.core_type<tc>, window_params = [{pipeline_mode = #tpu.pipeline_mode<synchronous>, transform_indices = @transform_0, window_bounds = array<i64: 16, 128>}, {pipeline_mode = #tpu.pipeline_mode<synchronous>, transform_indices = @transform_1, window_bounds = array<i64: 128, 128>}, {pipeline_mode = #tpu.pipeline_mode<synchronous>, transform_indices = @transform_2, window_bounds = array<i64: 1, 128>}, {pipeline_mode = #tpu.pipeline_mode<synchronous>, transform_indices = @transform_3, window_bounds = array<i64: 16, 128>}, {pipeline_mode = #tpu.pipeline_mode<synchronous>, transform_indices = @transform_4, window_bounds = array<i64: 16, 128>}]} {
    %c0 = arith.constant 0 : index
    %c0_0 = arith.constant 0 : index
    %0 = vector.load %arg1[%c0, %c0_0] : memref<16x128xbf16, #tpu.memory_space<vmem>>, vector<16x128xbf16>
    %c0_1 = arith.constant 0 : index
    %c0_2 = arith.constant 0 : index
    %1 = vector.load %arg2[%c0_1, %c0_2] : memref<128x128xbf16, #tpu.memory_space<vmem>>, vector<128x128xbf16>
    %cst = arith.constant dense<0.000000e+00> : vector<16x128xf32>
    %2 = tpu.matmul %0, %1, %cst {dimension_numbers = #tpu.dot_dimension_numbers<[1], [0], [0], [1], [0, 0, 1, 1], [], []>} : vector<16x128xbf16>, vector<128x128xbf16>, vector<16x128xf32> -> vector<16x128xf32>
    %c0_3 = arith.constant 0 : index
    %c0_4 = arith.constant 0 : index
    %3 = vector.load %arg3[%c0_3, %c0_4] : memref<1x128xf32, #tpu.memory_space<vmem>>, vector<1x128xf32>
    %4 = vector.broadcast %3 : vector<1x128xf32> to vector<16x128xf32>
    %5 = arith.addf %2, %4 : vector<16x128xf32>
    %c0_5 = arith.constant 0 : index
    %c0_6 = arith.constant 0 : index
    %6 = vector.load %arg4[%c0_5, %c0_6] : memref<16x128xf32, #tpu.memory_space<vmem>>, vector<16x128xf32>
    %7 = arith.mulf %5, %6 : vector<16x128xf32>
    %cst_7 = arith.constant dense<0.000000e+00> : vector<16xf32>
    %8 = vector.multi_reduction <add>, %7, %cst_7 [1] : vector<16x128xf32> to vector<16xf32>
    %9 = vector.shape_cast %8 : vector<16xf32> to vector<16x1xf32>
    %cst_8 = arith.constant 0.353553385 : f32
    %10 = vector.broadcast %cst_8 : f32 to vector<16x1xf32>
    %11 = arith.mulf %9, %10 : vector<16x1xf32>
    %12 = vector.shape_cast %11 : vector<16x1xf32> to vector<16x1xf32>
    %13 = vector.broadcast %12 : vector<16x1xf32> to vector<16x128xf32>
    %c0_9 = arith.constant 0 : index
    %c0_10 = arith.constant 0 : index
    %14 = vector.load %arg5[%c0_9, %c0_10] : memref<16x128xf32, #tpu.memory_space<vmem>>, vector<16x128xf32>
    tpu.vector_store %arg5[%c0_9, %c0_10], %13 {strides = array<i32>} : memref<16x128xf32, #tpu.memory_space<vmem>>, vector<16x128xf32>,
    return
  }
  func.func @transform_0(%arg0: i32) -> (i32, i32) {
    %c0_i32 = arith.constant 0 : i32
    %c0_i32_0 = arith.constant 0 : i32
    %c0_i32_1 = arith.constant 0 : i32
    return %c0_i32, %c0_i32_0 : i32, i32
  }
  func.func @transform_1(%arg0: i32) -> (i32, i32) {
    %c0_i32 = arith.constant 0 : i32
    %c0_i32_0 = arith.constant 0 : i32
    %c0_i32_1 = arith.constant 0 : i32
    return %c0_i32, %c0_i32_0 : i32, i32
  }
  func.func @transform_2(%arg0: i32) -> (i32, i32) {
    %c0_i32 = arith.constant 0 : i32
    %c0_i32_0 = arith.constant 0 : i32
    %c0_i32_1 = arith.constant 0 : i32
    return %c0_i32, %c0_i32_0 : i32, i32
  }
  func.func @transform_3(%arg0: i32) -> (i32, i32) {
    %c0_i32 = arith.constant 0 : i32
    %c0_i32_0 = arith.constant 0 : i32
    %c0_i32_1 = arith.constant 0 : i32
    return %c0_i32, %c0_i32_0 : i32, i32
  }
  func.func @transform_4(%arg0: i32) -> (i32, i32) {
    %c0_i32 = arith.constant 0 : i32
    %c0_i32_0 = arith.constant 0 : i32
    %c0_i32_1 = arith.constant 0 : i32
    return %c0_i32, %c0_i32_0 : i32, i32
  }
}

</mosaic_0001>

<bundles_post_ra>
// kernel: _lambda_.5
= control target key start
LH: loop header
LB: loop body
LE: loop exit
PB: predicated region body
PF: predicated region fallthrough
CT: control target
= control target key end

     0   :  { %v204_v0 = vmov 0.0   ;;  %vm205_vm0 = vmmov 0   ;;  %s273_s1 = inlined_call_operand.vmem [shape: bf16[128,128], index: 1, kind: input, shape index: {}]   ;;  %s274_s0 = inlined_call_operand.vmem [shape: bf16[16,128], index: 0, kind: input, shape index: {}]   ;;  %s275_s2 = inlined_call_operand.vmem [shape: f32[1,128], index: 2, kind: input, shape index: {}]   ;;  %s276_s3 = inlined_call_operand.vmem [shape: f32[16,128], index: 3, kind: input, shape index: {}]   ;;  %s277_s4 = inlined_call_operand.vmem [shape: f32[16,128], index: 4, kind: output, shape index: {}]  }
   0x1   :  { %173 = vmatprep.subr.bf16.mxu0 %v204_v0  ;;  %v195_v1 = vld [vmem:[%s273_s1] sm:$0xff]   ;;  %189 = vmatprep.mubr.msk.bf16.mxu0 %vm205_vm0, %v204_v0  ;;  %v196_v2 = vld [vmem:[%s273_s1 + $0x8] sm:$0xff]   ;;  %v197_v3 = vld [vmem:[%s273_s1 + $0x10] sm:$0xff]  }
   0x2   :  { %174 = vmatpush3.bf16.msra.mxu0 %v195_v1  ;;  %v198_v4 = vld [vmem:[%s273_s1 + $0x18] sm:$0xff]   ;;  %v199_v5 = vld [vmem:[%s273_s1 + $0x20] sm:$0xff]   ;;  %v200_v6 = vld [vmem:[%s273_s1 + $0x28] sm:$0xff]  }
   0x3   :  { %175 = vmatprep.subr.bf16.mxu0 %v204_v0  ;;  %v201_v7 = vld [vmem:[%s273_s1 + $0x30] sm:$0xff]   ;;  %v202_v8 = vld [vmem:[%s273_s1 + $0x38] sm:$0xff]   ;;  %v203_v9 = vld [vmem:[%s274_s0] sm:$0xff]  }
   0x4   :  { %v154_v10 = vld [vmem:[%s275_s2] ss:$0 sm:$0xff]  ;;  %v139_v19 = vld [vmem:[%s276_s3 + $0x8] sm:$0xff] }
   0x5   :  { %v138_v12 = vld [vmem:[%s276_s3] sm:$0xff] }
   0x6   :  { %176 = vmatpush3.bf16.msra.mxu0 %v196_v2 }
   0x7   :  { %177 = vmatprep.subr.bf16.mxu0 %v204_v0 }
   0xa   :  { %178 = vmatpush3.bf16.msra.mxu0 %v197_v3 }
   0xb   :  { %179 = vmatprep.subr.bf16.mxu0 %v204_v0 }
   0xe   :  { %180 = vmatpush3.bf16.msra.mxu0 %v198_v4 }
   0xf   :  { %181 = vmatprep.subr.bf16.mxu0 %v204_v0 }
  0x12   :  { %182 = vmatpush3.bf16.msra.mxu0 %v199_v5 }
  0x13   :  { %183 = vmatprep.subr.bf16.mxu0 %v204_v0 }
  0x16   :  { %184 = vmatpush3.bf16.msra.mxu0 %v200_v6 }
  0x17   :  { %185 = vmatprep.subr.bf16.mxu0 %v204_v0 }
  0x1a   :  { %186 = vmatpush3.bf16.msra.mxu0 %v201_v7 }
  0x1b   :  { %187 = vmatprep.subr.bf16.mxu0 %v204_v0 }
  0x1e   :  { %188 = vmatpush3.bf16.msra.mxu0 %v202_v8 }
  0x21   :  { %190 = vmatmul.mubr.bf16.vlgmr.msra.gmra.mrb[0].mxu0 %v203_v9 }
  0xf4   :  { %v131_v11 = vpop.f32.mrb[0].mxu0 }
  0xf5   :  { %v132_v13 = vadd.f32 %v154_v10, %v131_v11  ;;  %v191_v14 = vpop.f32.mrb[1].mxu0 }
  0xf6   :  { %v134_v15 = vpop.f32.mrb[2].mxu0 }
  0xf7   :  { %v135_v16 = vadd.f32 %v154_v10, %v134_v15  ;;  %v192_v17 = vpop.f32.mrb[3].mxu0  ;;  %v140_v18 = vmul.f32 %v138_v12, %v132_v13 }
  0xf9   :  { %142 = vadd.xlane.f32.xlu0 %v140_v18  ;;  %v141_v20 = vmul.f32 %v139_v19, %v135_v16 }
  0xfd   :  { %144 = vadd.xlane.f32.xlu0 %v141_v20 }
 0x186   :  { %v143_v21 = vpop.xlane.xlu0 %142 }
 0x187   :  { %v146_v22 = vmul.f32 0.35355338, %v143_v21 }
 0x189   :  { %148 = vst [vmem:[%s277_s4] sm:$0xff] %v146_v22 }
 0x18a   :  { %v145_v23 = vpop.xlane.xlu0 %144 }
 0x18b   :  { %v147_v24 = vmul.f32 0.35355338, %v145_v23 }
 0x18d   :  { %149 = vst [vmem:[%s277_s4 + $0x8] sm:$0xff] %v147_v24 }

// kernel: _lambda_.4
= control target key start
LH: loop header
LB: loop body
LE: loop exit
PB: predicated region body
PF: predicated region fallthrough
CT: control target
= control target key end

     0   :  { %8 = vsyncpa [#allocation5], 0  ;;  %s2853_s0 = inlined_call_operand.vmem [shape: bf16[16,32768], index: 0, kind: input, shape index: {}]   ;;  %s2854_s1 = inlined_call_operand.hbm [shape: bf16[32768,128], index: 1, kind: input, shape index: {}]   ;;  %s2855_s2 = inlined_call_operand.vmem [shape: f32[1,128], index: 2, kind: input, shape index: {}]   ;;  %s2856_s3 = inlined_call_operand.vmem [shape: bf16[16,128], index: 3, kind: output, shape index: {}]  }
   0x1   :  { %10 = vsyncpa [#allocation5 + $0x1], 0  ;;  %s2563_s12 = smov 0   ;;  %s2565_s13 = smov 0  }
   0x2   :  { %s2567_s14 = smov 0   ;;  %s2569_s15 = smov 0  }
   0x3   :  { %s2571_s16 = smov 0   ;;  %s2573_s17 = smov 0  }
   0x4 LB: > { %s1927_s18 = sadd.s32 4294967295, %s2537_s17   ;;  %s28_s19 = sadd.s32 1, %s2533_s16  ;;  %s2537_s17 = sphi %s2573_s17, %s16_s17   ;;  %s2533_s16 = sphi %s2571_s16, %s2863_s16   ;;  %s2529_s15 = sphi %s2569_s15, %s2862_s15   ;;  %s2525_s14 = sphi %s2567_s14, %s2861_s14   ;;  %s2521_s13 = sphi %s2565_s13, %s2860_s13   ;;  %s2517_s12 = sphi %s2563_s12, %s2859_s12  }
   0x5   : > { %p29_p0 = scmp.ge.s32.totalorder %s28_s19, 16  ;;  %s44_s20 = sadd.s32 1, %s2525_s14 }
   0x6   : > { %p51_p1 = scmp.ne.s32.totalorder %s2525_s14, %s2521_s13  ;;  %p52_p2 = scmp.eq.s32.totalorder %s2537_s17, 0 }
   0x7   : > { %s2865_s19 = smov (%p29_p0, %s28_s19), 0  ;;  %p85_p4 = scmp.ne.s32.totalorder %s2521_s13, %s2517_s12 }
   0x8   : > { %p2599_p3 = por %p52_p2, %p51_p1  ;;  %s40_s22 = ssub.s32 %s2533_s16, %s2865_s19 }
   0x9   : > { %p86_p5 = scmp.eq.s32.totalorder %s1927_s18, 0  ;;  %p42_p6 = scmp.eq.s32.totalorder %s40_s22, 0 }
   0xa   : > { %p1930_p8 = scmp.ge.s32.totalorder %s2537_s17, 16 }
   0xb   : > { %p2606_p7 = por %p86_p5, %p85_p4 }
   0xc   : > { %s2611_s24 = scalar_select %p42_p6, %s2525_s14, %s44_s20  }
   0xd   : > { %165 = sbr.rel (%p1930_p8) target bundleno = 58 (0x3a), region = 20 }
  0x14   : > { %168 = sbr.rel (!%p2599_p3) target bundleno = 32 (0x20), region = 24  ;;  %s170_s25 = sand.u32 (%p2599_p3), 1, %s2525_s14  }
  0x15   : > { %s2093_s26 = sshll.u32 (%p2599_p3), %s2533_s16, 6  ;;  %s1931_s27 = sshll.u32 (%p2599_p3), %s170_s25, 7 }
  0x16   : > { %s2621_s30 = scalar_lea.vmem (%p2599_p3), %s2853_s0, %s2093_s26  ;;  %s172_s4 = scalar_lea.vmem (%p2599_p3), [#allocation3], %s1931_s27 }
  0x17   : > { %v191_v0 = vld [vmem:[%s2621_s30] sm:$0xff] (%p2599_p3)  ;;  %v193_v1 = vld [vmem:[%s2621_s30 + $0x8] sm:$0xff] (%p2599_p3)  ;;  %v195_v2 = vld [vmem:[%s2621_s30 + $0x10] sm:$0xff] (%p2599_p3) }
  0x18   : > { %192 = vst [vmem:[%s172_s4] sm:$0xff] (%p2599_p3), %v191_v0  ;;  %194 = vst [vmem:[%s172_s4 + $0x8] sm:$0xff] (%p2599_p3), %v193_v1  ;;  %v197_v3 = vld [vmem:[%s2621_s30 + $0x18] sm:$0xff] (%p2599_p3)  ;;  %v199_v4 = vld [vmem:[%s2621_s30 + $0x20] sm:$0xff] (%p2599_p3) }
  0x19   : > { %196 = vst [vmem:[%s172_s4 + $0x10] sm:$0xff] (%p2599_p3), %v195_v2  ;;  %v201_v5 = vld [vmem:[%s2621_s30 + $0x28] sm:$0xff] (%p2599_p3)  ;;  %198 = vst [vmem:[%s172_s4 + $0x18] sm:$0xff] (%p2599_p3), %v197_v3  ;;  %v203_v6 = vld [vmem:[%s2621_s30 + $0x30] sm:$0xff] (%p2599_p3) }
  0x1a   : > { %200 = vst [vmem:[%s172_s4 + $0x20] sm:$0xff] (%p2599_p3), %v199_v4  ;;  %202 = vst [vmem:[%s172_s4 + $0x28] sm:$0xff] (%p2599_p3), %v201_v5  ;;  %v205_v7 = vld [vmem:[%s2621_s30 + $0x38] sm:$0xff] (%p2599_p3)  ;;  %v207_v8 = vld [vmem:[%s2621_s30 + $0x400] sm:$0xff] (%p2599_p3) }
  0x1b   : > { %204 = vst [vmem:[%s172_s4 + $0x30] sm:$0xff] %v203_v6  ;;  %206 = vst [vmem:[%s172_s4 + $0x38] sm:$0xff] %v205_v7  ;;  %v209_v9 = vld [vmem:[%s2621_s30 + $0x408] sm:$0xff]  ;;  %v211_v10 = vld [vmem:[%s2621_s30 + $0x410] sm:$0xff] }
  0x1c   : > { %208 = vst [vmem:[%s172_s4 + $0x40] sm:$0xff] %v207_v8  ;;  %v213_v11 = vld [vmem:[%s2621_s30 + $0x418] sm:$0xff]  ;;  %210 = vst [vmem:[%s172_s4 + $0x48] sm:$0xff] %v209_v9  ;;  %v215_v12 = vld [vmem:[%s2621_s30 + $0x420] sm:$0xff] }
  0x1d   : > { %212 = vst [vmem:[%s172_s4 + $0x50] sm:$0xff] %v211_v10  ;;  %214 = vst [vmem:[%s172_s4 + $0x58] sm:$0xff] %v213_v11  ;;  %v217_v13 = vld [vmem:[%s2621_s30 + $0x428] sm:$0xff]  ;;  %v219_v14 = vld [vmem:[%s2621_s30 + $0x430] sm:$0xff] }
  0x1e   : > { %216 = vst [vmem:[%s172_s4 + $0x60] sm:$0xff] %v215_v12  ;;  %218 = vst [vmem:[%s172_s4 + $0x68] sm:$0xff] %v217_v13  ;;  %v221_v15 = vld [vmem:[%s2621_s30 + $0x438] sm:$0xff] }
  0x1f   : > { %220 = vst [vmem:[%s172_s4 + $0x70] sm:$0xff] %v219_v14  ;;  %222 = vst [vmem:[%s172_s4 + $0x78] sm:$0xff] %v221_v15 }
  0x20 PF: > { %s229_s5 = sand.u32 1, %s2525_s14   ;;  %s2094_s6 = sshll.u32 %s2533_s16, 14 }
  0x21   : > { %s1934_s7 = sshll.u32 %s229_s5, 10  ;;  %s2644_s10 = scalar_lea.hbm %s2854_s1, %s2094_s6 }
  0x22   : > { %s233_s11 = scalar_lea.vmem [#allocation4], %s1934_s7  ;;  %s2648_s18 = scalar_lea.sflag [#allocation5], %s229_s5 }
  0x23   : > { %s241_s12 = sshll.u32 %s233_s11, 4  ;;  %s2459_s20 = scalar_lea.hbm %s2644_s10, 16384  ;;  %s2646_s12 = int_to_ptr.vmem [resolvable:$true] %s241_s12 }
  0x24   : > { %p2460_p9 = scmp.ne.s32.totalorder %s2644_s10, %s2459_s20  ;;  %s2463_s26 = scalar_lea.hbm %s2854_s1, 262144 }
  0x25   : > { %p2464_p12 = scmp.lt.u32.totalorder %s2644_s10, %s2854_s1  ;;  %p2465_p13 = scmp.lt.u32.totalorder %s2463_s26, %s2459_s20 }
  0x26   : > { %p2461_p10 = pnand %p2460_p9, %p2599_p3  ;;  %p2467_p1 = scmp.lt.u32.totalorder %s2459_s20, %s2644_s10 }
  0x27   : > { %p2466_p0 = por %p2465_p13, %p2464_p12 }
  0x28   : > { %p2462_p11 = pneg %p2461_p10 }
  0x29   : > { %p2468_p2 = por %p2467_p1, %p2466_p0 }
  0x2b   : > { %p2469_p4 = pnand %p2468_p2, %p2462_p11 }
  0x2d   : > { %2472 = shalt.err (!%p2469_p4)
}
  0x2e   : > { %s2473_s29 = scalar_lea.vmem %s2646_s12, 16384  ;;  %s2539_s30 = smov [#allocation4]  }
  0x2f   : > { %p2474_p5 = scmp.ne.s32.totalorder %s2646_s12, %s2473_s29  ;;  %s2477_s4 = sshll.u32 %s2539_s30, 4  ;;  %s2478_s4 = int_to_ptr.vmem [resolvable:$false] %s2477_s4 }
  0x30   : > { %s2479_s5 = scalar_lea.vmem %s2478_s4, 32768  ;;  %p2480_p9 = scmp.lt.s32.totalorder %s2646_s12, %s2478_s4 }
  0x31   : > { %p2475_p6 = pnand %p2474_p5, %p2599_p3  ;;  %p2481_p10 = scmp.lt.s32.totalorder %s2479_s5, %s2473_s29 }
  0x33   : > { %p2476_p8 = pneg %p2475_p6  ;;  %p2482_p12 = por %p2481_p10, %p2480_p9 }
  0x35   : > { %p2483_p13 = pnand %p2482_p12, %p2476_p8 }
  0x37   : > { %2486 = shalt.err (!%p2483_p13)
}
  0x38   : > { %s2540_s6 = smov 64   ;;  %s2541_s7 = smov 4  }
  0x39   : > { %2278 = dma.hbm_to_vmem [thread:$0]  (%p2599_p3), %s2644_s10, 16384, %s2646_s12, %s2648_s18, %s2540_s6, %s2540_s6, %s2541_s7  }
  0x3a PF: > { %p1937_p11 = scmp.ge.s32.totalorder %s2537_s17, 1  ;;  %p249_p0 = scmp.lt.s32.totalorder %s2537_s17, 17 }
  0x3c   : > { %p250_p1 = pnand %p1937_p11, %p249_p0 }
  0x3d   : > { %s256_s8 = sand.u32 (!%p250_p1), 1, %s2521_s13  }
  0x3e   : > { %253 = sbr.rel (%p250_p1) target bundleno = 448 (0x1c0), region = 51  ;;  %s1938_s9 = sshll.u32 (!%p250_p1), %s256_s8, 7 }
  0x3f   : > { %s1939_s11 = sshll.u32 (!%p250_p1), %s256_s8, 10  ;;  %s2675_s20 = scalar_lea.vmem (!%p250_p1), [#allocation3], %s1938_s9 }
  0x40   : > { %s263_s22 = scalar_lea.sflag (!%p250_p1), [#allocation5], %s256_s8  ;;  %s2677_s25 = scalar_lea.vmem (!%p250_p1), [#allocation4], %s1939_s11 }
  0x45   : > { %2512 = dma.done.wait (%p2606_p7), %s263_s22, 16384  }
  0x46   : > { %2514 = vsyncadd (%p2606_p7), %s263_s22, 4294950912  ;;  %p1940_p3 = scmp.ne.s32.totalorder %s2529_s15, 0 }
  0x47   : > { %v2542_v16 = vmov (!%p1940_p3), 0.0  }
  0x48   : > { %318 = sbr.rel (%p1940_p3) target bundleno = 79 (0x4f), region = 63  ;;  %319 = vst [vmem:[#allocation2] sm:$0xff] (!%p1940_p3), %v2542_v16  ;;  %320 = vst [vmem:[#allocation2 + $0x8] sm:$0xff] (!%p1940_p3), %v2542_v16 }
  0x4f PF: > { %v2331_v17 = vld [vmem:[%s2677_s25 + $0x40] sm:$0xff]   ;;  %v2335_v21 = vld [vmem:[%s2677_s25 + $0x48] sm:$0xff]   ;;  %v2339_v25 = vld [vmem:[%s2677_s25 + $0x50] sm:$0xff]   ;;  %p2085_p7 = scmp.ne.s32.totalorder %s2529_s15, 15 }
  0x50   : > { %v2332_v18 = vld [vmem:[%s2677_s25 + $0xc0] sm:$0xff]   ;;  %2102 = vmatprep.subr.bf16.mxu0 %v2331_v17  ;;  %v2336_v22 = vld [vmem:[%s2677_s25 + $0xc8] sm:$0xff]   ;;  %v2340_v26 = vld [vmem:[%s2677_s25 + $0xd0] sm:$0xff]  }
  0x51   : > { %v2333_v19 = vld [vmem:[%s2677_s25] sm:$0xff]   ;;  %2124 = vmatprep.subr.bf16.mxu1 %v2332_v18  ;;  %v2337_v23 = vld [vmem:[%s2677_s25 + $0x8] sm:$0xff]   ;;  %v2341_v27 = vld [vmem:[%s2677_s25 + $0x10] sm:$0xff]  }
  0x52   : > { %v2334_v20 = vld [vmem:[%s2677_s25 + $0x80] sm:$0xff]   ;;  %2103 = vmatpush3.bf16.msra.mxu0 %v2333_v19  ;;  %v2338_v24 = vld [vmem:[%s2677_s25 + $0x88] sm:$0xff]   ;;  %v2342_v28 = vld [vmem:[%s2677_s25 + $0x90] sm:$0xff]  }
  0x53   : > { %2125 = vmatpush3.bf16.msra.mxu1 %v2334_v20  ;;  %2104 = vmatprep.subr.bf16.mxu0 %v2335_v21  ;;  %v2343_v29 = vld [vmem:[%s2677_s25 + $0x58] sm:$0xff]   ;;  %v2347_v33 = vld [vmem:[%s2677_s25 + $0x60] sm:$0xff]   ;;  %v2351_v37 = vld [vmem:[%s2677_s25 + $0x68] sm:$0xff]  }
  0x54   : > { %2126 = vmatprep.subr.bf16.mxu1 %v2336_v22  ;;  %v2344_v30 = vld [vmem:[%s2677_s25 + $0xd8] sm:$0xff]   ;;  %v2348_v34 = vld [vmem:[%s2677_s25 + $0xe0] sm:$0xff]   ;;  %v2352_v38 = vld [vmem:[%s2677_s25 + $0xe8] sm:$0xff]  }
  0x55   : > { %v2345_v31 = vld [vmem:[%s2677_s25 + $0x18] sm:$0xff]   ;;  %v2349_v35 = vld [vmem:[%s2677_s25 + $0x20] sm:$0xff]   ;;  %v2353_v39 = vld [vmem:[%s2677_s25 + $0x28] sm:$0xff]  }
  0x56   : > { %2105 = vmatpush3.bf16.msra.mxu0 %v2337_v23  ;;  %v2346_v32 = vld [vmem:[%s2677_s25 + $0x98] sm:$0xff]   ;;  %v2350_v36 = vld [vmem:[%s2677_s25 + $0xa0] sm:$0xff]   ;;  %v2354_v40 = vld [vmem:[%s2677_s25 + $0xa8] sm:$0xff]  }
  0x57   : > { %2127 = vmatpush3.bf16.msra.mxu1 %v2338_v24  ;;  %2106 = vmatprep.subr.bf16.mxu0 %v2339_v25  ;;  %v2355_v41 = vld [vmem:[%s2677_s25 + $0x70] sm:$0xff]   ;;  %v2359_v45 = vld [vmem:[%s2677_s25 + $0x78] sm:$0xff]   ;;  %v323_v49 = vld [vmem:[%s2675_s20] sm:$0xff] }
  0x58   : > { %2128 = vmatprep.subr.bf16.mxu1 %v2340_v26  ;;  %v2356_v42 = vld [vmem:[%s2677_s25 + $0xf0] sm:$0xff]   ;;  %v2360_v46 = vld [vmem:[%s2677_s25 + $0xf8] sm:$0xff]   ;;  %v331_v50 = vld [vmem:[%s2675_s20 + $0x40] sm:$0xff] }
  0x59   : > { %v2357_v43 = vld [vmem:[%s2677_s25 + $0x30] sm:$0xff]   ;;  %v2361_v47 = vld [vmem:[%s2677_s25 + $0x38] sm:$0xff]   ;;  %v324_v51 = vld [vmem:[%s2675_s20 + $0x8] sm:$0xff]  ;;  %v1941_v52 = vcombine.low %v323_v49, %v331_v50  ;;  %v1942_v53 = vcombine.high %v323_v49, %v331_v50 }
  0x5a   : > { %2107 = vmatpush3.bf16.msra.mxu0 %v2341_v27  ;;  %v2358_v44 = vld [vmem:[%s2677_s25 + $0xb0] sm:$0xff]   ;;  %v2362_v48 = vld [vmem:[%s2677_s25 + $0xb8] sm:$0xff]   ;;  %v332_v54 = vld [vmem:[%s2675_s20 + $0x48] sm:$0xff] }
  0x5b   : > { %2129 = vmatpush3.bf16.msra.mxu1 %v2342_v28  ;;  %2108 = vmatprep.subr.bf16.mxu0 %v2343_v29  ;;  %v1943_v55 = vcombine.low %v324_v51, %v332_v54  ;;  %v1944_v56 = vcombine.high %v324_v51, %v332_v54  ;;  %v2363_v57 = vld [vmem:[%s2677_s25 + $0x140] sm:$0xff]   ;;  %v2367_v61 = vld [vmem:[%s2677_s25 + $0x148] sm:$0xff]   ;;  %v2371_v1 = vld [vmem:[%s2677_s25 + $0x150] sm:$0xff]  }
  0x5c   : > { %2130 = vmatprep.subr.bf16.mxu1 %v2344_v30  ;;  %1475 = vmatprep.mubr.bf16.mxu0 %v1942_v53  ;;  %v2364_v58 = vld [vmem:[%s2677_s25 + $0x1c0] sm:$0xff]   ;;  %v2368_v62 = vld [vmem:[%s2677_s25 + $0x1c8] sm:$0xff]   ;;  %v2372_v2 = vld [vmem:[%s2677_s25 + $0x1d0] sm:$0xff]  }
  0x5d   : > { %1516 = vmatprep.mubr.bf16.mxu1 %v1944_v56  ;;  %v2365_v59 = vld [vmem:[%s2677_s25 + $0x100] sm:$0xff]   ;;  %v2369_v63 = vld [vmem:[%s2677_s25 + $0x108] sm:$0xff]   ;;  %v2373_v3 = vld [vmem:[%s2677_s25 + $0x110] sm:$0xff]  }
  0x5e   : > { %2109 = vmatpush3.bf16.msra.mxu0 %v2345_v31  ;;  %v2366_v60 = vld [vmem:[%s2677_s25 + $0x180] sm:$0xff]   ;;  %v2370_v0 = vld [vmem:[%s2677_s25 + $0x188] sm:$0xff]   ;;  %v2374_v4 = vld [vmem:[%s2677_s25 + $0x190] sm:$0xff]  }
  0x5f   : > { %2131 = vmatpush3.bf16.msra.mxu1 %v2346_v32  ;;  %2110 = vmatprep.subr.bf16.mxu0 %v2347_v33  ;;  %v2375_v5 = vld [vmem:[%s2677_s25 + $0x158] sm:$0xff]   ;;  %v2379_v9 = vld [vmem:[%s2677_s25 + $0x160] sm:$0xff]   ;;  %v2383_v13 = vld [vmem:[%s2677_s25 + $0x168] sm:$0xff]  }
  0x60   : > { %2132 = vmatprep.subr.bf16.mxu1 %v2348_v34  ;;  %v2376_v6 = vld [vmem:[%s2677_s25 + $0x1d8] sm:$0xff]   ;;  %v2380_v10 = vld [vmem:[%s2677_s25 + $0x1e0] sm:$0xff]   ;;  %v2384_v14 = vld [vmem:[%s2677_s25 + $0x1e8] sm:$0xff]  }
  0x61   : > { %v2377_v7 = vld [vmem:[%s2677_s25 + $0x118] sm:$0xff]   ;;  %v2381_v11 = vld [vmem:[%s2677_s25 + $0x120] sm:$0xff]   ;;  %v2385_v15 = vld [vmem:[%s2677_s25 + $0x128] sm:$0xff]  }
  0x62   : > { %2111 = vmatpush3.bf16.msra.mxu0 %v2349_v35  ;;  %v2378_v8 = vld [vmem:[%s2677_s25 + $0x198] sm:$0xff]   ;;  %v2382_v12 = vld [vmem:[%s2677_s25 + $0x1a0] sm:$0xff]   ;;  %v2386_v16 = vld [vmem:[%s2677_s25 + $0x1a8] sm:$0xff]  }
  0x63   : > { %2133 = vmatpush3.bf16.msra.mxu1 %v2350_v36  ;;  %2112 = vmatprep.subr.bf16.mxu0 %v2351_v37  ;;  %v2387_v17 = vld [vmem:[%s2677_s25 + $0x170] sm:$0xff]   ;;  %v2391_v21 = vld [vmem:[%s2677_s25 + $0x178] sm:$0xff]   ;;  %v2395_v33 = vld [vmem:[%s2677_s25 + $0x240] sm:$0xff]  }
  0x64   : > { %2134 = vmatprep.subr.bf16.mxu1 %v2352_v38  ;;  %v2388_v18 = vld [vmem:[%s2677_s25 + $0x1f0] sm:$0xff]   ;;  %v2392_v22 = vld [vmem:[%s2677_s25 + $0x1f8] sm:$0xff]   ;;  %v2396_v34 = vld [vmem:[%s2677_s25 + $0x2c0] sm:$0xff]  }
  0x65   : > { %v2389_v19 = vld [vmem:[%s2677_s25 + $0x130] sm:$0xff]   ;;  %v2393_v23 = vld [vmem:[%s2677_s25 + $0x138] sm:$0xff]   ;;  %v2397_v35 = vld [vmem:[%s2677_s25 + $0x200] sm:$0xff]  }
  0x66   : > { %2113 = vmatpush3.bf16.msra.mxu0 %v2353_v39  ;;  %v2390_v20 = vld [vmem:[%s2677_s25 + $0x1b0] sm:$0xff]   ;;  %v2394_v24 = vld [vmem:[%s2677_s25 + $0x1b8] sm:$0xff]   ;;  %v2398_v36 = vld [vmem:[%s2677_s25 + $0x280] sm:$0xff]  }
  0x67   : > { %2135 = vmatpush3.bf16.msra.mxu1 %v2354_v40  ;;  %2114 = vmatprep.subr.bf16.mxu0 %v2355_v41  ;;  %v325_v25 = vld [vmem:[%s2675_s20 + $0x10] sm:$0xff]  ;;  %v326_v29 = vld [vmem:[%s2675_s20 + $0x18] sm:$0xff]  ;;  %v2399_v37 = vld [vmem:[%s2677_s25 + $0x248] sm:$0xff]  }
  0x68   : > { %2136 = vmatprep.subr.bf16.mxu1 %v2356_v42  ;;  %v333_v26 = vld [vmem:[%s2675_s20 + $0x50] sm:$0xff]  ;;  %v334_v30 = vld [vmem:[%s2675_s20 + $0x58] sm:$0xff]  ;;  %v2400_v38 = vld [vmem:[%s2677_s25 + $0x2c8] sm:$0xff]  }
  0x69   : > { %v1945_v27 = vcombine.low %v325_v25, %v333_v26  ;;  %v1946_v28 = vcombine.high %v325_v25, %v333_v26  ;;  %v1947_v31 = vcombine.low %v326_v29, %v334_v30  ;;  %v1948_v32 = vcombine.high %v326_v29, %v334_v30  ;;  %v2401_v39 = vld [vmem:[%s2677_s25 + $0x208] sm:$0xff]   ;;  %v2403_v41 = vld [vmem:[%s2677_s25 + $0x250] sm:$0xff]   ;;  %v2411_v49 = vld [vmem:[%s2677_s25 + $0x260] sm:$0xff]  }
  0x6a   : > { %2115 = vmatpush3.bf16.msra.mxu0 %v2357_v43  ;;  %v2402_v40 = vld [vmem:[%s2677_s25 + $0x288] sm:$0xff]   ;;  %v2404_v42 = vld [vmem:[%s2677_s25 + $0x2d0] sm:$0xff]   ;;  %v2412_v50 = vld [vmem:[%s2677_s25 + $0x2e0] sm:$0xff]  }
  0x6b   : > { %2137 = vmatpush3.bf16.msra.mxu1 %v2358_v44  ;;  %2116 = vmatprep.subr.bf16.mxu0 %v2359_v45  ;;  %v2405_v43 = vld [vmem:[%s2677_s25 + $0x210] sm:$0xff]   ;;  %v2407_v45 = vld [vmem:[%s2677_s25 + $0x258] sm:$0xff]   ;;  %v2413_v51 = vld [vmem:[%s2677_s25 + $0x220] sm:$0xff]  }
  0x6c   : > { %2138 = vmatprep.subr.bf16.mxu1 %v2360_v46  ;;  %v2406_v44 = vld [vmem:[%s2677_s25 + $0x290] sm:$0xff]   ;;  %v2408_v46 = vld [vmem:[%s2677_s25 + $0x2d8] sm:$0xff]   ;;  %v2415_v53 = vld [vmem:[%s2677_s25 + $0x268] sm:$0xff]  }
  0x6d   : > { %v2416_v54 = vld [vmem:[%s2677_s25 + $0x2e8] sm:$0xff]   ;;  %v2443_v25 = vld [vmem:[%s2677_s25 + $0x360] sm:$0xff]  }
  0x6e   : > { %2117 = vmatpush3.bf16.msra.mxu0 %v2361_v47  ;;  %v2409_v47 = vld [vmem:[%s2677_s25 + $0x218] sm:$0xff]   ;;  %v2418_v56 = vld [vmem:[%s2677_s25 + $0x2a8] sm:$0xff]   ;;  %v2444_v26 = vld [vmem:[%s2677_s25 + $0x3e0] sm:$0xff]  }
  0x6f   : > { %2139 = vmatpush3.bf16.msra.mxu1 %v2362_v48  ;;  %2146 = vmatprep.subr.bf16.mxu0 %v2363_v57  ;;  %v2410_v48 = vld [vmem:[%s2677_s25 + $0x298] sm:$0xff]   ;;  %v2419_v57 = vld [vmem:[%s2677_s25 + $0x270] sm:$0xff]   ;;  %v2447_v29 = vld [vmem:[%s2677_s25 + $0x368] sm:$0xff]  }
  0x70   : > { %2168 = vmatprep.subr.bf16.mxu1 %v2364_v58  ;;  %v2420_v58 = vld [vmem:[%s2677_s25 + $0x2f0] sm:$0xff]   ;;  %v2448_v30 = vld [vmem:[%s2677_s25 + $0x3e8] sm:$0xff]  }
  0x71   : > { %1476 = vmatmul.mubr.bf16.vlgmr.msra.gmra.mrb[0].mxu0 %v1941_v52  ;;  %v2414_v52 = vld [vmem:[%s2677_s25 + $0x2a0] sm:$0xff]  }
  0x72   : > { %1517 = vmatmul.mubr.bf16.vlgmr.msra.gmra.mrb[0].mxu1 %v1943_v55  ;;  %2147 = vmatpush3.bf16.msra.mxu0 %v2365_v59  ;;  %v2417_v55 = vld [vmem:[%s2677_s25 + $0x228] sm:$0xff]   ;;  %v2421_v59 = vld [vmem:[%s2677_s25 + $0x230] sm:$0xff]  }
  0x73   : > { %2169 = vmatpush3.bf16.msra.mxu1 %v2366_v60  ;;  %2148 = vmatprep.subr.bf16.mxu0 %v2367_v61  ;;  %v2422_v60 = vld [vmem:[%s2677_s25 + $0x2b0] sm:$0xff]   ;;  %v2423_v61 = vld [vmem:[%s2677_s25 + $0x278] sm:$0xff]  }
  0x74   : > { %2170 = vmatprep.subr.bf16.mxu1 %v2368_v62  ;;  %1557 = vmatprep.mubr.bf16.mxu0 %v1946_v28  ;;  %v2424_v62 = vld [vmem:[%s2677_s25 + $0x2f8] sm:$0xff]   ;;  %v2446_v28 = vld [vmem:[%s2677_s25 + $0x3a0] sm:$0xff]  }
  0x75   : > { %1598 = vmatprep.mubr.bf16.mxu1 %v1948_v32  ;;  %v2450_v32 = vld [vmem:[%s2677_s25 + $0x3a8] sm:$0xff]  }
  0x76   : > { %2149 = vmatpush3.bf16.msra.mxu0 %v2369_v63  ;;  %v2425_v63 = vld [vmem:[%s2677_s25 + $0x238] sm:$0xff]  }
  0x77   : > { %2171 = vmatpush3.bf16.msra.mxu1 %v2370_v0  ;;  %2150 = vmatprep.subr.bf16.mxu0 %v2371_v1  ;;  %v2426_v0 = vld [vmem:[%s2677_s25 + $0x2b8] sm:$0xff]   ;;  %v327_v1 = vld [vmem:[%s2675_s20 + $0x20] sm:$0xff] }
  0x78   : > { %2172 = vmatprep.subr.bf16.mxu1 %v2372_v2  ;;  %v335_v2 = vld [vmem:[%s2675_s20 + $0x60] sm:$0xff] }
  0x7a   : > { %2151 = vmatpush3.bf16.msra.mxu0 %v2373_v3  ;;  %v328_v3 = vld [vmem:[%s2675_s20 + $0x28] sm:$0xff] }
  0x7b   : > { %2173 = vmatpush3.bf16.msra.mxu1 %v2374_v4  ;;  %2152 = vmatprep.subr.bf16.mxu0 %v2375_v5  ;;  %v336_v4 = vld [vmem:[%s2675_s20 + $0x68] sm:$0xff]  ;;  %v1949_v5 = vcombine.low %v327_v1, %v335_v2 }
  0x7c   : > { %2174 = vmatprep.subr.bf16.mxu1 %v2376_v6  ;;  %v1950_v6 = vcombine.high %v327_v1, %v335_v2 }
  0x7e   : > { %2153 = vmatpush3.bf16.msra.mxu0 %v2377_v7  ;;  %v1951_v7 = vcombine.low %v328_v3, %v336_v4 }
  0x7f   : > { %2175 = vmatpush3.bf16.msra.mxu1 %v2378_v8  ;;  %2154 = vmatprep.subr.bf16.mxu0 %v2379_v9  ;;  %v1952_v8 = vcombine.high %v328_v3, %v336_v4  ;;  %v2427_v9 = vld [vmem:[%s2677_s25 + $0x340] sm:$0xff]  }
  0x80   : > { %2176 = vmatprep.subr.bf16.mxu1 %v2380_v10  ;;  %v2428_v10 = vld [vmem:[%s2677_s25 + $0x3c0] sm:$0xff]  }
  0x82   : > { %2155 = vmatpush3.bf16.msra.mxu0 %v2381_v11  ;;  %v2429_v11 = vld [vmem:[%s2677_s25 + $0x300] sm:$0xff]  }
  0x83   : > { %2177 = vmatpush3.bf16.msra.mxu1 %v2382_v12  ;;  %2156 = vmatprep.subr.bf16.mxu0 %v2383_v13  ;;  %v2430_v12 = vld [vmem:[%s2677_s25 + $0x380] sm:$0xff]   ;;  %v2431_v13 = vld [vmem:[%s2677_s25 + $0x348] sm:$0xff]  }
  0x84   : > { %2178 = vmatprep.subr.bf16.mxu1 %v2384_v14  ;;  %v2432_v14 = vld [vmem:[%s2677_s25 + $0x3c8] sm:$0xff]  }
  0x86   : > { %2157 = vmatpush3.bf16.msra.mxu0 %v2385_v15  ;;  %v2433_v15 = vld [vmem:[%s2677_s25 + $0x308] sm:$0xff]  }
  0x87   : > { %2179 = vmatpush3.bf16.msra.mxu1 %v2386_v16  ;;  %2158 = vmatprep.subr.bf16.mxu0 %v2387_v17  ;;  %v2434_v16 = vld [vmem:[%s2677_s25 + $0x388] sm:$0xff]   ;;  %v2435_v17 = vld [vmem:[%s2677_s25 + $0x350] sm:$0xff]  }
  0x88   : > { %2180 = vmatprep.subr.bf16.mxu1 %v2388_v18  ;;  %v2436_v18 = vld [vmem:[%s2677_s25 + $0x3d0] sm:$0xff]  }
  0x8a   : > { %2159 = vmatpush3.bf16.msra.mxu0 %v2389_v19  ;;  %v2437_v19 = vld [vmem:[%s2677_s25 + $0x310] sm:$0xff]  }
  0x8b   : > { %2181 = vmatpush3.bf16.msra.mxu1 %v2390_v20  ;;  %2160 = vmatprep.subr.bf16.mxu0 %v2391_v21  ;;  %v2438_v20 = vld [vmem:[%s2677_s25 + $0x390] sm:$0xff]   ;;  %v2439_v21 = vld [vmem:[%s2677_s25 + $0x358] sm:$0xff]  }
  0x8c   : > { %2182 = vmatprep.subr.bf16.mxu1 %v2392_v22  ;;  %v2440_v22 = vld [vmem:[%s2677_s25 + $0x3d8] sm:$0xff]  }
  0x8e   : > { %2161 = vmatpush3.bf16.msra.mxu0 %v2393_v23  ;;  %v2441_v23 = vld [vmem:[%s2677_s25 + $0x318] sm:$0xff]  }
  0x8f   : > { %2183 = vmatpush3.bf16.msra.mxu1 %v2394_v24  ;;  %2190 = vmatprep.subr.bf16.mxu0 %v2395_v33  ;;  %v2442_v24 = vld [vmem:[%s2677_s25 + $0x398] sm:$0xff]   ;;  %v2451_v33 = vld [vmem:[%s2677_s25 + $0x370] sm:$0xff]  }
  0x90   : > { %2212 = vmatprep.subr.bf16.mxu1 %v2396_v34  ;;  %v2452_v34 = vld [vmem:[%s2677_s25 + $0x3f0] sm:$0xff]  }
  0x91   : > { %1558 = vmatmul.mubr.bf16.vlgmr.msra.gmra.mrb[4].mxu0 %v1945_v27  ;;  %v2445_v27 = vld [vmem:[%s2677_s25 + $0x320] sm:$0xff]  }
  0x92   : > { %1599 = vmatmul.mubr.bf16.vlgmr.msra.gmra.mrb[4].mxu1 %v1947_v31  ;;  %2191 = vmatpush3.bf16.msra.mxu0 %v2397_v35  ;;  %v2449_v31 = vld [vmem:[%s2677_s25 + $0x328] sm:$0xff]   ;;  %v2453_v35 = vld [vmem:[%s2677_s25 + $0x330] sm:$0xff]  }
  0x93   : > { %2213 = vmatpush3.bf16.msra.mxu1 %v2398_v36  ;;  %2192 = vmatprep.subr.bf16.mxu0 %v2399_v37  ;;  %v2454_v36 = vld [vmem:[%s2677_s25 + $0x3b0] sm:$0xff]   ;;  %v2455_v37 = vld [vmem:[%s2677_s25 + $0x378] sm:$0xff]  }
  0x94   : > { %2214 = vmatprep.subr.bf16.mxu1 %v2400_v38  ;;  %1639 = vmatprep.mubr.bf16.mxu0 %v1950_v6  ;;  %v2456_v38 = vld [vmem:[%s2677_s25 + $0x3f8] sm:$0xff]  }
  0x95   : > { %1680 = vmatprep.mubr.bf16.mxu1 %v1952_v8 }
  0x96   : > { %2193 = vmatpush3.bf16.msra.mxu0 %v2401_v39  ;;  %v2457_v39 = vld [vmem:[%s2677_s25 + $0x338] sm:$0xff]  }
  0x97   : > { %2215 = vmatpush3.bf16.msra.mxu1 %v2402_v40  ;;  %2194 = vmatprep.subr.bf16.mxu0 %v2403_v41  ;;  %v2458_v40 = vld [vmem:[%s2677_s25 + $0x3b8] sm:$0xff]   ;;  %v329_v41 = vld [vmem:[%s2675_s20 + $0x30] sm:$0xff] }
  0x98   : > { %2216 = vmatprep.subr.bf16.mxu1 %v2404_v42  ;;  %v337_v42 = vld [vmem:[%s2675_s20 + $0x70] sm:$0xff] }
  0x9a   : > { %2195 = vmatpush3.bf16.msra.mxu0 %v2405_v43  ;;  %v330_v43 = vld [vmem:[%s2675_s20 + $0x38] sm:$0xff] }
  0x9b   : > { %2217 = vmatpush3.bf16.msra.mxu1 %v2406_v44  ;;  %2196 = vmatprep.subr.bf16.mxu0 %v2407_v45  ;;  %v1953_v44 = vcombine.low %v329_v41, %v337_v42  ;;  %v1954_v45 = vcombine.high %v329_v41, %v337_v42 }
  0x9c   : > { %2218 = vmatprep.subr.bf16.mxu1 %v2408_v46  ;;  %v338_v46 = vld [vmem:[%s2675_s20 + $0x78] sm:$0xff] }
  0x9e   : > { %2197 = vmatpush3.bf16.msra.mxu0 %v2409_v47  ;;  %v1955_v47 = vcombine.low %v330_v43, %v338_v46 }
  0x9f   : > { %2219 = vmatpush3.bf16.msra.mxu1 %v2410_v48  ;;  %2198 = vmatprep.subr.bf16.mxu0 %v2411_v49  ;;  %v1956_v48 = vcombine.high %v330_v43, %v338_v46  ;;  %v321_v43 = vld [vmem:[#allocation2] sm:$0xff] }
  0xa0   : > { %2220 = vmatprep.subr.bf16.mxu1 %v2412_v50 }
  0xa2   : > { %2199 = vmatpush3.bf16.msra.mxu0 %v2413_v51 }
  0xa3   : > { %2221 = vmatpush3.bf16.msra.mxu1 %v2414_v52  ;;  %2200 = vmatprep.subr.bf16.mxu0 %v2415_v53 }
  0xa4   : > { %2222 = vmatprep.subr.bf16.mxu1 %v2416_v54 }
  0xa6   : > { %2201 = vmatpush3.bf16.msra.mxu0 %v2417_v55 }
  0xa7   : > { %2223 = vmatpush3.bf16.msra.mxu1 %v2418_v56  ;;  %2202 = vmatprep.subr.bf16.mxu0 %v2419_v57 }
  0xa8   : > { %2224 = vmatprep.subr.bf16.mxu1 %v2420_v58 }
  0xaa   : > { %2203 = vmatpush3.bf16.msra.mxu0 %v2421_v59 }
  0xab   : > { %2225 = vmatpush3.bf16.msra.mxu1 %v2422_v60  ;;  %2204 = vmatprep.subr.bf16.mxu0 %v2423_v61 }
  0xac   : > { %2226 = vmatprep.subr.bf16.mxu1 %v2424_v62 }
  0xae   : > { %2205 = vmatpush3.bf16.msra.mxu0 %v2425_v63 }
  0xaf   : > { %2227 = vmatpush3.bf16.msra.mxu1 %v2426_v0  ;;  %2234 = vmatprep.subr.bf16.mxu0 %v2427_v9 }
  0xb0   : > { %2256 = vmatprep.subr.bf16.mxu1 %v2428_v10 }
  0xb1   : > { %1640 = vmatmul.mubr.bf16.vlgmr.msra.gmra.mrb[8].mxu0 %v1949_v5 }
  0xb2   : > { %1681 = vmatmul.mubr.bf16.vlgmr.msra.gmra.mrb[8].mxu1 %v1951_v7  ;;  %2235 = vmatpush3.bf16.msra.mxu0 %v2429_v11 }
  0xb3   : > { %2257 = vmatpush3.bf16.msra.mxu1 %v2430_v12  ;;  %2236 = vmatprep.subr.bf16.mxu0 %v2431_v13 }
  0xb4   : > { %2258 = vmatprep.subr.bf16.mxu1 %v2432_v14  ;;  %1721 = vmatprep.mubr.bf16.mxu0 %v1954_v45 }
  0xb5   : > { %1762 = vmatprep.mubr.bf16.mxu1 %v1956_v48 }
  0xb6   : > { %2237 = vmatpush3.bf16.msra.mxu0 %v2433_v15 }
  0xb7   : > { %2259 = vmatpush3.bf16.msra.mxu1 %v2434_v16  ;;  %2238 = vmatprep.subr.bf16.mxu0 %v2435_v17 }
  0xb8   : > { %2260 = vmatprep.subr.bf16.mxu1 %v2436_v18 }
  0xba   : > { %2239 = vmatpush3.bf16.msra.mxu0 %v2437_v19 }
  0xbb   : > { %2261 = vmatpush3.bf16.msra.mxu1 %v2438_v20  ;;  %2240 = vmatprep.subr.bf16.mxu0 %v2439_v21 }
  0xbc   : > { %2262 = vmatprep.subr.bf16.mxu1 %v2440_v22 }
  0xbe   : > { %2241 = vmatpush3.bf16.msra.mxu0 %v2441_v23 }
  0xbf   : > { %2263 = vmatpush3.bf16.msra.mxu1 %v2442_v24  ;;  %2242 = vmatprep.subr.bf16.mxu0 %v2443_v25 }
  0xc0   : > { %2264 = vmatprep.subr.bf16.mxu1 %v2444_v26 }
  0xc2   : > { %2243 = vmatpush3.bf16.msra.mxu0 %v2445_v27 }
  0xc3   : > { %2265 = vmatpush3.bf16.msra.mxu1 %v2446_v28  ;;  %2244 = vmatprep.subr.bf16.mxu0 %v2447_v29 }
  0xc4   : > { %2266 = vmatprep.subr.bf16.mxu1 %v2448_v30 }
  0xc6   : > { %2245 = vmatpush3.bf16.msra.mxu0 %v2449_v31 }
  0xc7   : > { %2267 = vmatpush3.bf16.msra.mxu1 %v2450_v32  ;;  %2246 = vmatprep.subr.bf16.mxu0 %v2451_v33 }
  0xc8   : > { %2268 = vmatprep.subr.bf16.mxu1 %v2452_v34 }
  0xca   : > { %2247 = vmatpush3.bf16.msra.mxu0 %v2453_v35 }
  0xcb   : > { %2269 = vmatpush3.bf16.msra.mxu1 %v2454_v36  ;;  %2248 = vmatprep.subr.bf16.mxu0 %v2455_v37 }
  0xcc   : > { %2270 = vmatprep.subr.bf16.mxu1 %v2456_v38 }
  0xce   : > { %2249 = vmatpush3.bf16.msra.mxu0 %v2457_v39 }
  0xcf   : > { %2271 = vmatpush3.bf16.msra.mxu1 %v2458_v40 }
  0xd1   : > { %1722 = vmatmul.mubr.bf16.vlgmr.msra.gmra.mrb[12].mxu0 %v1953_v44 }
  0xd2   : > { %1763 = vmatmul.mubr.bf16.vlgmr.msra.gmra.mrb[12].mxu1 %v1955_v47  ;;  %v322_v47 = vld [vmem:[#allocation2 + $0x8] sm:$0xff] }
 0x144   : > { %v2118_v49 = vpop.f32.mrb[0].mxu0 }
 0x145   : > { %v2140_v50 = vpop.f32.mrb[0].mxu1  ;;  %v2119_v51 = vpop.f32.mrb[1].mxu0 }
 0x146   : > { %v2120_v52 = vadd.f32 %v2119_v51, %v2118_v49  ;;  %v2141_v53 = vpop.f32.mrb[1].mxu1  ;;  %v2121_v54 = vpop.f32.mrb[2].mxu0 }
 0x147   : > { %v2142_v55 = vadd.f32 %v2141_v53, %v2140_v50  ;;  %v2143_v56 = vpop.f32.mrb[2].mxu1  ;;  %v2122_v57 = vpop.f32.mrb[3].mxu0  ;;  %v2086_v53 = vld [vmem:[%s2855_s2] ss:$0 sm:$0xff] (!%p2085_p7) }
 0x148   : > { %v2123_v58 = vadd.f32 %v2122_v57, %v2121_v54  ;;  %v2144_v59 = vpop.f32.mrb[3].mxu1 }
 0x149   : > { %v1519_v60 = vadd.f32 %v2142_v55, %v2120_v52  ;;  %v2145_v61 = vadd.f32 %v2144_v59, %v2143_v56 }
 0x14b   : > { %v1522_v62 = vadd.f32 %v2145_v61, %v2123_v58 }
 0x164   : > { %v2162_v63 = vpop.f32.mrb[4].mxu0 }
 0x165   : > { %v2184_v0 = vpop.f32.mrb[4].mxu1  ;;  %v2163_v1 = vpop.f32.mrb[5].mxu0 }
 0x166   : > { %v2164_v2 = vadd.f32 %v2163_v1, %v2162_v63  ;;  %v2185_v3 = vpop.f32.mrb[5].mxu1  ;;  %v2165_v4 = vpop.f32.mrb[6].mxu0 }
 0x167   : > { %v2186_v5 = vadd.f32 %v2185_v3, %v2184_v0  ;;  %v2187_v6 = vpop.f32.mrb[6].mxu1  ;;  %v2166_v7 = vpop.f32.mrb[7].mxu0 }
 0x168   : > { %v1560_v8 = vadd.f32 %v2164_v2, %v1519_v60  ;;  %v2167_v9 = vadd.f32 %v2166_v7, %v2165_v4  ;;  %v2188_v10 = vpop.f32.mrb[7].mxu1 }
 0x169   : > { %v2189_v11 = vadd.f32 %v2188_v10, %v2187_v6 }
 0x16a   : > { %v1601_v12 = vadd.f32 %v2186_v5, %v1560_v8  ;;  %v1563_v13 = vadd.f32 %v2167_v9, %v1522_v62 }
 0x16c   : > { %v1604_v14 = vadd.f32 %v2189_v11, %v1563_v13 }
 0x184   : > { %v2206_v15 = vpop.f32.mrb[8].mxu0 }
 0x185   : > { %v2228_v16 = vpop.f32.mrb[8].mxu1  ;;  %v2207_v17 = vpop.f32.mrb[9].mxu0 }
 0x186   : > { %v2229_v18 = vpop.f32.mrb[9].mxu1  ;;  %v2208_v19 = vadd.f32 %v2207_v17, %v2206_v15  ;;  %v2209_v21 = vpop.f32.mrb[10].mxu0 }
 0x187   : > { %v2230_v20 = vadd.f32 %v2229_v18, %v2228_v16  ;;  %v2231_v22 = vpop.f32.mrb[10].mxu1  ;;  %v2210_v23 = vpop.f32.mrb[11].mxu0 }
 0x188   : > { %v2232_v24 = vpop.f32.mrb[11].mxu1  ;;  %v1642_v25 = vadd.f32 %v2208_v19, %v1601_v12  ;;  %v2211_v26 = vadd.f32 %v2210_v23, %v2209_v21 }
 0x189   : > { %v2233_v27 = vadd.f32 %v2232_v24, %v2231_v22 }
 0x18a   : > { %v1683_v28 = vadd.f32 %v2230_v20, %v1642_v25  ;;  %v1645_v29 = vadd.f32 %v2211_v26, %v1604_v14 }
 0x18c   : > { %v1686_v30 = vadd.f32 %v2233_v27, %v1645_v29 }
 0x1a4   : > { %v2250_v31 = vpop.f32.mrb[12].mxu0 }
 0x1a5   : > { %v2272_v32 = vpop.f32.mrb[12].mxu1  ;;  %v2251_v33 = vpop.f32.mrb[13].mxu0 }
 0x1a6   : > { %v2252_v34 = vadd.f32 %v2251_v33, %v2250_v31  ;;  %v2273_v35 = vpop.f32.mrb[13].mxu1  ;;  %v2253_v36 = vpop.f32.mrb[14].mxu0 }
 0x1a7   : > { %v2274_v37 = vadd.f32 %v2273_v35, %v2272_v32  ;;  %v2275_v38 = vpop.f32.mrb[14].mxu1  ;;  %v2254_v39 = vpop.f32.mrb[15].mxu0 }
 0x1a8   : > { %v1724_v40 = vadd.f32 %v2252_v34, %v1683_v28  ;;  %v2255_v41 = vadd.f32 %v2254_v39, %v2253_v36  ;;  %v2276_v42 = vpop.f32.mrb[15].mxu1 }
 0x1a9   : > { %v2277_v44 = vadd.f32 %v2276_v42, %v2275_v38 }
 0x1aa   : > { %v1765_v45 = vadd.f32 %v2274_v37, %v1724_v40  ;;  %v1727_v46 = vadd.f32 %v2255_v41, %v1686_v30  ;;  %1778 = sbr.rel (%p2085_p7) target bundleno = 448 (0x1c0), region = 67 }
 0x1ac   : > { %v1771_v48 = vadd.f32 %v1765_v45, %v321_v43  ;;  %v1768_v49 = vadd.f32 %v2277_v44, %v1727_v46 }
 0x1ae   : > { %1773 = vst [vmem:[#allocation2] sm:$0xff] %v1771_v48  ;;  %v1772_v50 = vadd.f32 %v1768_v49, %v322_v47 }
 0x1b0   : > { %1774 = vst [vmem:[#allocation2 + $0x8] sm:$0xff] %v1772_v50 }
 0x1b5   : > { %v1779_v51 = vld [vmem:[#allocation2] sm:$0xff] }
 0x1b6   : > { %v1788_v54 = vadd.f32 %v2086_v53, %v1779_v51 }
 0x1b7   : > { %v1780_v52 = vld [vmem:[#allocation2 + $0x8] sm:$0xff] }
 0x1b8   : > { %v1789_v55 = vadd.f32 %v2086_v53, %v1780_v52  ;;  %vm1790_vm0 = vcmp.ge.f32.partialorder %v1788_v54, 0.0  ;;  %v1792_v56 = vmul.f32 0.2, %v1788_v54 }
 0x1ba   : > { %vm1791_vm1 = vcmp.ge.f32.partialorder %v1789_v55, 0.0  ;;  %v1793_v57 = vmul.f32 0.2, %v1789_v55  ;;  %v1794_v58 = vsel %vm1790_vm0, %v1788_v54, %v1792_v56 }
 0x1bc   : > { %v1795_v59 = vsel %vm1791_vm1, %v1789_v55, %v1793_v57 }
 0x1bd   : > { %v2100_v60 = vpack.c.bf16 %v1795_v59, %v1794_v58 }
 0x1bf   : > { %2101 = vst [vmem:[%s2856_s3] sm:$0xff] %v2100_v60  }
 0x1c0 PF: > { %s16_s17 = sadd.s32 1, %s2537_s17   ;;  %s2859_s12 = smov %s2521_s13 }
 0x1c1   : > { %p13_p2 = scmp.ge.s32.totalorder %s16_s17, 18   ;;  %s2860_s13 = smov %s2525_s14 }
 0x1c2   : > { %s2861_s14 = smov %s2611_s24  ;;  %s2862_s15 = smov %s2533_s16 }
 0x1c3   : > { %s2863_s16 = smov %s2865_s19  ;;  %15 = sbr.rel (!%p13_p2) target bundleno = 4 (0x4), region = 114 }
 0x1ca   :  { %1834 = vsyncpa [#allocation5], 1 }
 0x1cb   :  { %1836 = vsyncpa [#allocation5 + $0x1], 1 }

// kernel: _lambda_.3
= control target key start
LH: loop header
LB: loop body
LE: loop exit
PB: predicated region body
PF: predicated region fallthrough
CT: control target
= control target key end

     0   :  { %8 = vsyncpa [#allocation3], 0  ;;  %s5840_s12 = smov 0   ;;  %s6133_s0 = inlined_call_operand.vmem [shape: bf16[2,3,18,16,128], index: 0, kind: input, shape index: {}]   ;;  %s6134_s1 = inlined_call_operand.hbm [shape: bf16[9,128,128], index: 1, kind: input, shape index: {}]   ;;  %s6135_s2 = inlined_call_operand.vmem [shape: f32[1,128], index: 2, kind: input, shape index: {}]   ;;  %s6136_s3 = inlined_call_operand.vmem [shape: bf16[2,256,128], index: 3, kind: output, shape index: {}]  }
   0x1 LB: > { %s5846_s13 = sadd.s32 4294967295, %s5815_s12   ;;  %p3968_p0 = scmp.ge.s32.totalorder %s5815_s12, 1  ;;  %s5815_s12 = sphi %s5840_s12, %s14_s12  }
   0x2   : > { %p113_p1 = scmp.lt.s32.totalorder %s5815_s12, 3  ;;  %s5817_s14 = smov [#allocation2]  }
   0x3   : > { %s125_s15 = sshll.u32 %s5817_s14, 4  ;;  %p6137_p3 = scmp.eq.s32.totalorder %s5846_s13, 0  ;;  %s126_s15 = int_to_ptr.vmem [resolvable:$true] %s125_s15 }
   0x4   : > { %p5850_p2 = pnand %p3968_p0, %p113_p1  ;;  %s5777_s20 = scalar_lea.hbm %s6134_s1, 9216 }
   0x5   : > { %p5778_p6 = scmp.ne.s32.totalorder %s6134_s1, %s5777_s20  ;;  %p5784_p10 = scmp.lt.u32.totalorder %s5777_s20, %s6134_s1 }
   0x6   : > { %s6139_s16 = scalar_select %p5850_p2, 1, 0 }
   0x7   : > { %p5536_p4 = pneg %p5850_p2 }
   0x9   : > { %p5859_p5 = pnand %p6137_p3, %p5536_p4 }
   0xb   : > { %p5779_p7 = pneg %p5859_p5 }
   0xd   : > { %p5780_p8 = pnand %p5779_p7, %p5778_p6 }
   0xf   : > { %p5781_p9 = pneg %p5780_p8 }
  0x11   : > { %p5786_p11 = pnand %p5784_p10, %p5781_p9 }
  0x13   : > { %5789 = shalt.err (!%p5786_p11)
}
  0x14   : > { %s5790_s25 = scalar_lea.vmem %s126_s15, 9216  ;;  %p5798_p1 = scmp.lt.s32.totalorder %s126_s15, %s126_s15 }
  0x15   : > { %p5791_p12 = scmp.ne.s32.totalorder %s126_s15, %s5790_s25  ;;  %p5799_p4 = scmp.lt.s32.totalorder %s5790_s25, %s5790_s25 }
  0x17   : > { %p5793_p13 = pnand %p5791_p12, %p5779_p7  ;;  %p5800_p3 = por %p5799_p4, %p5798_p1 }
  0x19   : > { %p5794_p0 = pneg %p5793_p13 }
  0x1b   : > { %p5801_p2 = pnand %p5800_p3, %p5794_p0 }
  0x1d   : > { %5804 = shalt.err (!%p5801_p2)
}
  0x1e   : > { %s5818_s26 = smov 64   ;;  %s5819_s27 = smov 4  }
  0x1f   : > { %5539 = dma.hbm_to_vmem [thread:$0]  (!%p5859_p5), %s6134_s1, 9216, %s126_s15, [#allocation3], %s5818_s26, %s5818_s26, %s5819_s27  }
  0x20   : > { %p6141_p6 = scmp.ne.s32.totalorder %s6139_s16, 0 }
  0x21   : > { %p6142_p8 = scmp.eq.s32.totalorder (!%p6141_p6), %s5846_s13, 0 }
  0x22   : > { %152 = sbr.rel (%p6141_p6) target bundleno = 581 (0x245), region = 32 }
  0x29   : > { %5810 = dma.done.wait (%p6142_p8), [#allocation3], 9216   ;;  %p6143_p7 = pmov %p6142_p8 }
  0x2a   : > { %v5553_v0 = vld [vmem:[#allocation2 + $0x40] sm:$0xff]   ;;  %p176_p2 = scmp.lt.s32.totalorder %s5846_s13, 1  ;;  %v5555_v2 = vld [vmem:[#allocation2 + $0x48] sm:$0xff]   ;;  %v5557_v4 = vld [vmem:[#allocation2 + $0x50] sm:$0xff]  }
  0x2b   : > { %5812 = vsyncadd (%p6143_p7), [#allocation3], 4294958080  ;;  %v5554_v1 = vld [vmem:[#allocation2 + $0x100] sm:$0xff]   ;;  %4827 = vmatprep.subr.bf16.mxu1 %v5553_v0  ;;  %v5556_v3 = vld [vmem:[#allocation2 + $0x108] sm:$0xff]  }
  0x2c   : > { %5019 = vmatprep.subr.bf16.mxu0 %v5554_v1  ;;  %4828 = vmatpush3.bf16.msra.mxu1 %v5553_v0  ;;  %v5558_v5 = vld [vmem:[#allocation2 + $0x110] sm:$0xff]   ;;  %s6145_s13 = smov (!%p176_p2, %s5846_s13), 1  ;;  %v5559_v6 = vld [vmem:[#allocation2 + $0x58] sm:$0xff]   ;;  %v5561_v8 = vld [vmem:[#allocation2 + $0x60] sm:$0xff]  }
  0x2d   : > { %5020 = vmatpush3.bf16.msra.mxu0 %v5554_v1  ;;  %4829 = vmatprep.subr.bf16.mxu1 %v5555_v2  ;;  %v5560_v7 = vld [vmem:[#allocation2 + $0x118] sm:$0xff]   ;;  %s5531_s30 = smul.u32 432, %s6145_s13  ;;  %v5562_v9 = vld [vmem:[#allocation2 + $0x120] sm:$0xff]   ;;  %v5563_v10 = vld [vmem:[#allocation2 + $0x68] sm:$0xff]   ;;  %s4483_s9 = sshll.u32 %s6145_s13, 7 }
  0x2e   : > { %5021 = vmatprep.subr.bf16.mxu0 %v5556_v3  ;;  %v5564_v11 = vld [vmem:[#allocation2 + $0x128] sm:$0xff]   ;;  %v5565_v14 = vld [vmem:[#allocation2 + $0x70] sm:$0xff]   ;;  %v5567_v16 = vld [vmem:[#allocation2 + $0x78] sm:$0xff]   ;;  %s6076_s14 = scalar_lea.vmem %s6136_s3, %s4483_s9 }
  0x2f   : > { %s5893_s6 = scalar_lea.vmem %s6133_s0, %s5531_s30  ;;  %v5566_v15 = vld [vmem:[#allocation2 + $0x130] sm:$0xff]   ;;  %v5568_v17 = vld [vmem:[#allocation2 + $0x138] sm:$0xff]   ;;  %v5572_v19 = vld [vmem:[#allocation2] sm:$0xff]  }
  0x30   : > { %4830 = vmatpush3.bf16.msra.mxu1 %v5555_v2  ;;  %v5569_v12 = vld [vmem:[%s5893_s6 + $0x90] sm:$0xff]   ;;  %v5570_v13 = vld [vmem:[%s5893_s6 + $0x98] sm:$0xff]   ;;  %v5574_v20 = vld [vmem:[#allocation2 + $0x140] sm:$0xff]  }
  0x31   : > { %5022 = vmatpush3.bf16.msra.mxu0 %v5556_v3  ;;  %4831 = vmatprep.subr.bf16.mxu1 %v5557_v4  ;;  %v5571_v18 = vld [vmem:[%s5893_s6 + $0x98] sm:$0xff]   ;;  %v5573_v21 = vld [vmem:[%s5893_s6 + $0xa0] sm:$0xff]   ;;  %v5575_v22 = vld [vmem:[#allocation2 + $0x148] sm:$0xff]  }
  0x32   : > { %5023 = vmatprep.subr.bf16.mxu0 %v5558_v5  ;;  %4843 = vmatprep.mubr.bf16.mxu1 %v5569_v12  ;;  %v5576_v23 = vld [vmem:[%s5893_s6 + $0xa0] sm:$0xff]   ;;  %v5577_v24 = vld [vmem:[%s5893_s6 + $0xa8] sm:$0xff]   ;;  %v5586_v27 = vld [vmem:[#allocation2 + $0x10] sm:$0xff]  }
  0x33   : > { %5035 = vmatprep.mubr.bf16.mxu0 %v5570_v13  ;;  %v5579_v25 = vld [vmem:[#allocation2 + $0x8] sm:$0xff]   ;;  %v5581_v28 = vld [vmem:[#allocation2 + $0x150] sm:$0xff]   ;;  %v5584_v31 = vld [vmem:[%s5893_s6 + $0xb8] sm:$0xff]  }
  0x34   : > { %4832 = vmatpush3.bf16.msra.mxu1 %v5557_v4  ;;  %v5578_v26 = vld [vmem:[%s5893_s6 + $0xa8] sm:$0xff]   ;;  %v5580_v29 = vld [vmem:[%s5893_s6 + $0xb0] sm:$0xff]   ;;  %v5582_v32 = vld [vmem:[#allocation2 + $0x158] sm:$0xff]  }
  0x35   : > { %5024 = vmatpush3.bf16.msra.mxu0 %v5558_v5  ;;  %4833 = vmatprep.subr.bf16.mxu1 %v5559_v6  ;;  %v5583_v30 = vld [vmem:[%s5893_s6 + $0xb0] sm:$0xff]   ;;  %v5593_v33 = vld [vmem:[#allocation2 + $0x18] sm:$0xff]   ;;  %v5587_v35 = vld [vmem:[%s5893_s6 + $0xc0] sm:$0xff]  }
  0x36   : > { %5025 = vmatprep.subr.bf16.mxu0 %v5560_v7  ;;  %v5585_v34 = vld [vmem:[%s5893_s6 + $0xb8] sm:$0xff]   ;;  %v5588_v36 = vld [vmem:[#allocation2 + $0x160] sm:$0xff]   ;;  %v5591_v39 = vld [vmem:[%s5893_s6 + $0xc8] sm:$0xff]  }
  0x37   : > { %v5590_v37 = vld [vmem:[%s5893_s6 + $0xc0] sm:$0xff]   ;;  %v5589_v40 = vld [vmem:[#allocation2 + $0x168] sm:$0xff]   ;;  %v5595_v42 = vld [vmem:[#allocation2 + $0x170] sm:$0xff]  }
  0x38   : > { %4834 = vmatpush3.bf16.msra.mxu1 %v5559_v6  ;;  %v5600_v38 = vld [vmem:[#allocation2 + $0x20] sm:$0xff]   ;;  %v5592_v41 = vld [vmem:[%s5893_s6 + $0xc8] sm:$0xff]   ;;  %v5594_v44 = vld [vmem:[%s5893_s6 + $0xd0] sm:$0xff]  }
  0x39   : > { %5026 = vmatpush3.bf16.msra.mxu0 %v5560_v7  ;;  %4835 = vmatprep.subr.bf16.mxu1 %v5561_v8  ;;  %v5606_v43 = vld [vmem:[#allocation2 + $0x28] sm:$0xff]   ;;  %v5597_v45 = vld [vmem:[%s5893_s6 + $0xd0] sm:$0xff]   ;;  %v5596_v47 = vld [vmem:[#allocation2 + $0x178] sm:$0xff]  }
  0x3a   : > { %5027 = vmatprep.subr.bf16.mxu0 %v5562_v9  ;;  %v5598_v46 = vld [vmem:[%s5893_s6 + $0x128] sm:$0xff]   ;;  %v5612_v48 = vld [vmem:[#allocation2 + $0x30] sm:$0xff]   ;;  %v5599_v49 = vld [vmem:[%s5893_s6 + $0xd8] sm:$0xff]  }
  0x3b   : > { %v5601_v50 = vld [vmem:[%s5893_s6 + $0x130] sm:$0xff]   ;;  %v5602_v51 = vld [vmem:[#allocation2 + $0x180] sm:$0xff]   ;;  %v5604_v53 = vld [vmem:[%s5893_s6 + $0x138] sm:$0xff]  }
  0x3c   : > { %4836 = vmatpush3.bf16.msra.mxu1 %v5561_v8  ;;  %v5603_v52 = vld [vmem:[%s5893_s6 + $0xe0] sm:$0xff]   ;;  %v5608_v54 = vld [vmem:[#allocation2 + $0x188] sm:$0xff]   ;;  %v5618_v55 = vld [vmem:[#allocation2 + $0x38] sm:$0xff]  }
  0x3d   : > { %5028 = vmatpush3.bf16.msra.mxu0 %v5562_v9  ;;  %4837 = vmatprep.subr.bf16.mxu1 %v5563_v10  ;;  %v5605_v56 = vld [vmem:[%s5893_s6 + $0xe8] sm:$0xff]   ;;  %v5607_v57 = vld [vmem:[%s5893_s6 + $0x140] sm:$0xff]   ;;  %v5614_v58 = vld [vmem:[#allocation2 + $0x190] sm:$0xff]  }
  0x3e   : > { %5029 = vmatprep.subr.bf16.mxu0 %v5564_v11  ;;  %v5609_v59 = vld [vmem:[%s5893_s6 + $0xf0] sm:$0xff]   ;;  %v5624_v60 = vld [vmem:[#allocation2 + $0x80] sm:$0xff]   ;;  %v5610_v61 = vld [vmem:[%s5893_s6 + $0x148] sm:$0xff]  }
  0x3f   : > { %v5620_v62 = vld [vmem:[#allocation2 + $0x198] sm:$0xff]   ;;  %v5626_v0 = vld [vmem:[#allocation2 + $0x1a0] sm:$0xff]   ;;  %v5613_v1 = vld [vmem:[%s5893_s6 + $0x150] sm:$0xff]  }
  0x40   : > { %4838 = vmatpush3.bf16.msra.mxu1 %v5563_v10  ;;  %v5611_v63 = vld [vmem:[%s5893_s6 + $0xf8] sm:$0xff]   ;;  %v5615_v2 = vld [vmem:[%s5893_s6 + $0x100] sm:$0xff]   ;;  %v5632_v4 = vld [vmem:[#allocation2 + $0x1a8] sm:$0xff]  }
  0x41   : > { %5030 = vmatpush3.bf16.msra.mxu0 %v5564_v11  ;;  %4839 = vmatprep.subr.bf16.mxu1 %v5565_v14  ;;  %v5616_v3 = vld [vmem:[%s5893_s6 + $0x158] sm:$0xff]   ;;  %v5617_v5 = vld [vmem:[%s5893_s6 + $0x108] sm:$0xff]   ;;  %v5638_v6 = vld [vmem:[#allocation2 + $0x1b0] sm:$0xff]  }
  0x42   : > { %5031 = vmatprep.subr.bf16.mxu0 %v5566_v15  ;;  %v5619_v7 = vld [vmem:[%s5893_s6 + $0x160] sm:$0xff]   ;;  %v5622_v9 = vld [vmem:[%s5893_s6 + $0x168] sm:$0xff]   ;;  %v5644_v10 = vld [vmem:[#allocation2 + $0x1b8] sm:$0xff]  }
  0x43   : > { %v5621_v8 = vld [vmem:[%s5893_s6] sm:$0xff]   ;;  %v5623_v11 = vld [vmem:[%s5893_s6 + $0x8] sm:$0xff]   ;;  %v5625_v12 = vld [vmem:[%s5893_s6 + $0x170] sm:$0xff]  }
  0x44   : > { %4840 = vmatpush3.bf16.msra.mxu1 %v5565_v14  ;;  %v5627_v13 = vld [vmem:[%s5893_s6 + $0x10] sm:$0xff]   ;;  %v5628_v14 = vld [vmem:[%s5893_s6 + $0x178] sm:$0xff]  }
  0x45   : > { %5032 = vmatpush3.bf16.msra.mxu0 %v5566_v15  ;;  %4841 = vmatprep.subr.bf16.mxu1 %v5567_v16  ;;  %v5630_v15 = vld [vmem:[#allocation2 + $0x88] sm:$0xff]  }
  0x46   : > { %5033 = vmatprep.subr.bf16.mxu0 %v5568_v17 }
  0x48   : > { %4842 = vmatpush3.bf16.msra.mxu1 %v5567_v16  ;;  %v5650_v16 = vld [vmem:[#allocation2 + $0x1c0] sm:$0xff]  }
  0x49   : > { %5034 = vmatpush3.bf16.msra.mxu0 %v5568_v17  ;;  %4875 = vmatprep.subr.bf16.mxu1 %v5572_v19  ;;  %v5636_v17 = vld [vmem:[#allocation2 + $0x90] sm:$0xff]  }
  0x4a   : > { %5067 = vmatprep.subr.bf16.mxu0 %v5574_v20 }
  0x4b   : > { %4844 = vmatmul.mubr.bf16.vlgmr.msra.gmra.mrb[0].mxu1 %v5571_v18  ;;  %v5629_v18 = vld [vmem:[%s5893_s6 + $0x18] sm:$0xff]  }
  0x4c   : > { %5036 = vmatmul.mubr.bf16.vlgmr.msra.gmra.mrb[0].mxu0 %v5573_v21  ;;  %4876 = vmatpush3.bf16.msra.mxu1 %v5572_v19  ;;  %v5631_v19 = vld [vmem:[%s5893_s6 + $0x180] sm:$0xff]   ;;  %v5634_v21 = vld [vmem:[%s5893_s6 + $0x188] sm:$0xff]  }
  0x4d   : > { %5068 = vmatpush3.bf16.msra.mxu0 %v5574_v20  ;;  %4847 = vmatprep.mubr.bf16.mxu1 %v5576_v23  ;;  %v5633_v20 = vld [vmem:[%s5893_s6 + $0x20] sm:$0xff]   ;;  %v5635_v23 = vld [vmem:[%s5893_s6 + $0x28] sm:$0xff]  }
  0x4e   : > { %5069 = vmatprep.subr.bf16.mxu0 %v5575_v22  ;;  %5039 = vmatprep.mubr.bf16.mxu0 %v5577_v24  ;;  %v5648_v24 = vld [vmem:[#allocation2 + $0xa0] sm:$0xff]  }
  0x4f   : > { %4877 = vmatprep.subr.bf16.mxu1 %v5579_v25 }
  0x50   : > { %4878 = vmatpush3.bf16.msra.mxu1 %v5579_v25  ;;  %v5637_v25 = vld [vmem:[%s5893_s6 + $0x190] sm:$0xff]  }
  0x51   : > { %5070 = vmatpush3.bf16.msra.mxu0 %v5575_v22  ;;  %4879 = vmatprep.subr.bf16.mxu1 %v5586_v27  ;;  %v5642_v22 = vld [vmem:[#allocation2 + $0x98] sm:$0xff]  }
  0x52   : > { %5071 = vmatprep.subr.bf16.mxu0 %v5581_v28 }
  0x53   : > { %4848 = vmatmul.mubr.bf16.gmra.mrb[4].mxu1 %v5578_v26  ;;  %v5639_v26 = vld [vmem:[%s5893_s6 + $0x30] sm:$0xff]  }
  0x54   : > { %5040 = vmatmul.mubr.bf16.gmra.mrb[4].mxu0 %v5580_v29  ;;  %4851 = vmatprep.mubr.bf16.mxu1 %v5583_v30  ;;  %v5641_v29 = vld [vmem:[%s5893_s6 + $0x38] sm:$0xff]   ;;  %v5660_v30 = vld [vmem:[#allocation2 + $0xb0] sm:$0xff]  }
  0x55   : > { %5072 = vmatpush3.bf16.msra.mxu0 %v5581_v28  ;;  %5043 = vmatprep.mubr.bf16.mxu0 %v5584_v31  ;;  %v5654_v28 = vld [vmem:[#allocation2 + $0xa8] sm:$0xff]   ;;  %v5643_v31 = vld [vmem:[%s5893_s6 + $0x1a0] sm:$0xff]  }
  0x56   : > { %5073 = vmatprep.subr.bf16.mxu0 %v5582_v32  ;;  %4880 = vmatpush3.bf16.msra.mxu1 %v5586_v27  ;;  %v5640_v27 = vld [vmem:[%s5893_s6 + $0x198] sm:$0xff]  }
  0x57   : > { %4881 = vmatprep.subr.bf16.mxu1 %v5593_v33 }
  0x59   : > { %5074 = vmatpush3.bf16.msra.mxu0 %v5582_v32  ;;  %v5645_v32 = vld [vmem:[%s5893_s6 + $0x40] sm:$0xff]  }
  0x5a   : > { %5075 = vmatprep.subr.bf16.mxu0 %v5588_v36  ;;  %4882 = vmatpush3.bf16.msra.mxu1 %v5593_v33  ;;  %v5646_v33 = vld [vmem:[%s5893_s6 + $0x10] sm:$0xff]  }
  0x5b   : > { %4852 = vmatmul.mubr.bf16.gmra.mrb[8].mxu1 %v5585_v34  ;;  %4883 = vmatprep.subr.bf16.mxu1 %v5600_v38  ;;  %v5666_v34 = vld [vmem:[#allocation2 + $0xb8] sm:$0xff]  }
  0x5c   : > { %5044 = vmatmul.mubr.bf16.gmra.mrb[8].mxu0 %v5587_v35  ;;  %4855 = vmatprep.mubr.bf16.mxu1 %v5590_v37  ;;  %v5647_v35 = vld [vmem:[%s5893_s6 + $0x48] sm:$0xff]   ;;  %v5649_v37 = vld [vmem:[%s5893_s6 + $0x18] sm:$0xff]  }
  0x5d   : > { %5076 = vmatpush3.bf16.msra.mxu0 %v5588_v36  ;;  %5047 = vmatprep.mubr.bf16.mxu0 %v5591_v39  ;;  %v5946_v36 = vld [vmem:[#allocation2 + $0xc0] sm:$0xff]  }
  0x5e   : > { %5077 = vmatprep.subr.bf16.mxu0 %v5589_v40  ;;  %4884 = vmatpush3.bf16.msra.mxu1 %v5600_v38  ;;  %v5651_v38 = vld [vmem:[%s5893_s6 + $0x50] sm:$0xff]   ;;  %v5652_v39 = vld [vmem:[%s5893_s6 + $0x20] sm:$0xff]  }
  0x5f   : > { %4885 = vmatprep.subr.bf16.mxu1 %v5606_v43 }
  0x61   : > { %5078 = vmatpush3.bf16.msra.mxu0 %v5589_v40  ;;  %v5656_v40 = vld [vmem:[#allocation2 + $0x1c8] sm:$0xff]  }
  0x62   : > { %5079 = vmatprep.subr.bf16.mxu0 %v5595_v42  ;;  %4886 = vmatpush3.bf16.msra.mxu1 %v5606_v43  ;;  %v5655_v43 = vld [vmem:[%s5893_s6 + $0x28] sm:$0xff]  }
  0x63   : > { %4856 = vmatmul.mubr.bf16.gmra.mrb[12].mxu1 %v5592_v41  ;;  %4887 = vmatprep.subr.bf16.mxu1 %v5612_v48  ;;  %v5653_v41 = vld [vmem:[%s5893_s6 + $0x58] sm:$0xff]  }
  0x64   : > { %5048 = vmatmul.mubr.bf16.gmra.mrb[12].mxu0 %v5594_v44  ;;  %4859 = vmatprep.mubr.bf16.mxu1 %v5597_v45  ;;  %v5657_v44 = vld [vmem:[%s5893_s6 + $0x60] sm:$0xff]   ;;  %v5658_v45 = vld [vmem:[%s5893_s6 + $0x30] sm:$0xff]  }
  0x65   : > { %5080 = vmatpush3.bf16.msra.mxu0 %v5595_v42  ;;  %5083 = vmatprep.mubr.bf16.mxu0 %v5598_v46  ;;  %v5662_v42 = vld [vmem:[#allocation2 + $0x1d0] sm:$0xff]   ;;  %v5668_v46 = vld [vmem:[#allocation2 + $0x1d8] sm:$0xff]  }
  0x66   : > { %5081 = vmatprep.subr.bf16.mxu0 %v5596_v47  ;;  %4888 = vmatpush3.bf16.msra.mxu1 %v5612_v48  ;;  %v5674_v48 = vld [vmem:[#allocation2 + $0x1e0] sm:$0xff]  }
  0x67   : > { %4889 = vmatprep.subr.bf16.mxu1 %v5618_v55 }
  0x69   : > { %5082 = vmatpush3.bf16.msra.mxu0 %v5596_v47  ;;  %v5659_v47 = vld [vmem:[%s5893_s6 + $0x68] sm:$0xff]  }
  0x6a   : > { %5115 = vmatprep.subr.bf16.mxu0 %v5602_v51  ;;  %4890 = vmatpush3.bf16.msra.mxu1 %v5618_v55  ;;  %v5667_v55 = vld [vmem:[%s5893_s6 + $0x48] sm:$0xff]  }
  0x6b   : > { %4860 = vmatmul.mubr.bf16.gmra.mrb[16].mxu1 %v5599_v49  ;;  %4923 = vmatprep.subr.bf16.mxu1 %v5624_v60  ;;  %v5661_v49 = vld [vmem:[%s5893_s6 + $0x38] sm:$0xff]  }
  0x6c   : > { %5084 = vmatmul.mubr.bf16.vlgmr.msra.gmra.mrb[0].mxu0 %v5601_v50  ;;  %4863 = vmatprep.mubr.bf16.mxu1 %v5603_v52  ;;  %v5663_v50 = vld [vmem:[%s5893_s6 + $0x70] sm:$0xff]   ;;  %v5680_v52 = vld [vmem:[#allocation2 + $0x1e8] sm:$0xff]  }
  0x6d   : > { %5116 = vmatpush3.bf16.msra.mxu0 %v5602_v51  ;;  %5087 = vmatprep.mubr.bf16.mxu0 %v5604_v53  ;;  %v5664_v51 = vld [vmem:[%s5893_s6 + $0x40] sm:$0xff]   ;;  %v5665_v53 = vld [vmem:[%s5893_s6 + $0x78] sm:$0xff]  }
  0x6e   : > { %5117 = vmatprep.subr.bf16.mxu0 %v5608_v54 }
  0x71   : > { %5118 = vmatpush3.bf16.msra.mxu0 %v5608_v54  ;;  %v5686_v54 = vld [vmem:[#allocation2 + $0x1f0] sm:$0xff]  }
  0x72   : > { %5119 = vmatprep.subr.bf16.mxu0 %v5614_v58 }
  0x73   : > { %4864 = vmatmul.mubr.bf16.gmra.mrb[20].mxu1 %v5605_v56  ;;  %v5669_v56 = vld [vmem:[%s5893_s6 + $0x120] sm:$0xff]  }
  0x74   : > { %5088 = vmatmul.mubr.bf16.gmra.mrb[4].mxu0 %v5607_v57  ;;  %4867 = vmatprep.mubr.bf16.mxu1 %v5609_v59  ;;  %v5670_v57 = vld [vmem:[%s5893_s6 + $0x50] sm:$0xff]   ;;  %v5671_v59 = vld [vmem:[%s5893_s6 + $0x128] sm:$0xff]  }
  0x75   : > { %5091 = vmatprep.mubr.bf16.mxu0 %v5610_v61  ;;  %5120 = vmatpush3.bf16.msra.mxu0 %v5614_v58  ;;  %v5692_v58 = vld [vmem:[#allocation2 + $0x1f8] sm:$0xff]  }
  0x76   : > { %5121 = vmatprep.subr.bf16.mxu0 %v5620_v62  ;;  %v5673_v61 = vld [vmem:[%s5893_s6 + $0x58] sm:$0xff]  }
  0x79   : > { %5122 = vmatpush3.bf16.msra.mxu0 %v5620_v62  ;;  %v5675_v62 = vld [vmem:[%s5893_s6 + $0x130] sm:$0xff]  }
  0x7a   : > { %5123 = vmatprep.subr.bf16.mxu0 %v5626_v0 }
  0x7b   : > { %4868 = vmatmul.mubr.bf16.gmra.mrb[24].mxu1 %v5611_v63  ;;  %v5676_v63 = vld [vmem:[%s5893_s6 + $0x60] sm:$0xff]  }
  0x7c   : > { %5092 = vmatmul.mubr.bf16.gmra.mrb[8].mxu0 %v5613_v1  ;;  %4871 = vmatprep.mubr.bf16.mxu1 %v5615_v2  ;;  %v5684_v1 = vld [vmem:[#allocation2 + $0xd0] sm:$0xff]   ;;  %v5677_v2 = vld [vmem:[%s5893_s6 + $0x138] sm:$0xff]  }
  0x7d   : > { %5095 = vmatprep.mubr.bf16.mxu0 %v5616_v3  ;;  %5124 = vmatpush3.bf16.msra.mxu0 %v5626_v0  ;;  %v5678_v0 = vld [vmem:[#allocation2 + $0xc8] sm:$0xff]  }
  0x7e   : > { %5125 = vmatprep.subr.bf16.mxu0 %v5632_v4  ;;  %v5679_v3 = vld [vmem:[%s5893_s6 + $0x68] sm:$0xff]  }
  0x81   : > { %5126 = vmatpush3.bf16.msra.mxu0 %v5632_v4  ;;  %v5681_v4 = vld [vmem:[%s5893_s6 + $0x140] sm:$0xff]  }
  0x82   : > { %5127 = vmatprep.subr.bf16.mxu0 %v5638_v6 }
  0x83   : > { %4872 = vmatmul.mubr.bf16.gmra.mrb[28].mxu1 %v5617_v5  ;;  %v5682_v5 = vld [vmem:[%s5893_s6 + $0x70] sm:$0xff]  }
  0x84   : > { %5096 = vmatmul.mubr.bf16.gmra.mrb[12].mxu0 %v5619_v7  ;;  %4891 = vmatprep.mubr.bf16.mxu1 %v5621_v8  ;;  %v5683_v7 = vld [vmem:[%s5893_s6 + $0x148] sm:$0xff]   ;;  %v5696_v8 = vld [vmem:[#allocation2 + $0xe0] sm:$0xff]  }
  0x85   : > { %5099 = vmatprep.mubr.bf16.mxu0 %v5622_v9  ;;  %5128 = vmatpush3.bf16.msra.mxu0 %v5638_v6  ;;  %v5690_v6 = vld [vmem:[#allocation2 + $0xd8] sm:$0xff]  }
  0x86   : > { %5129 = vmatprep.subr.bf16.mxu0 %v5644_v10  ;;  %v5685_v9 = vld [vmem:[%s5893_s6 + $0x78] sm:$0xff]  }
  0x89   : > { %5130 = vmatpush3.bf16.msra.mxu0 %v5644_v10  ;;  %v5687_v10 = vld [vmem:[%s5893_s6 + $0x150] sm:$0xff]  }
  0x8a   : > { %5163 = vmatprep.subr.bf16.mxu0 %v5650_v16 }
  0x8b   : > { %4892 = vmatmul.mubr.bf16.vlgmr.msra.gmra.mrb[0].mxu1 %v5623_v11  ;;  %v5688_v11 = vld [vmem:[%s5893_s6 + $0x80] sm:$0xff]  }
  0x8c   : > { %5100 = vmatmul.mubr.bf16.gmra.mrb[16].mxu0 %v5625_v12  ;;  %4924 = vmatpush3.bf16.msra.mxu1 %v5624_v60  ;;  %v5965_v60 = vld [vmem:[#allocation2 + $0x200] sm:$0xff]   ;;  %v5702_v12 = vld [vmem:[#allocation2 + $0xe8] sm:$0xff]  }
  0x8d   : > { %4895 = vmatprep.mubr.bf16.mxu1 %v5627_v13  ;;  %5103 = vmatprep.mubr.bf16.mxu0 %v5628_v14  ;;  %v5689_v13 = vld [vmem:[%s5893_s6 + $0x158] sm:$0xff]   ;;  %v5708_v14 = vld [vmem:[#allocation2 + $0xf0] sm:$0xff]  }
  0x8e   : > { %4925 = vmatprep.subr.bf16.mxu1 %v5630_v15 }
  0x90   : > { %4926 = vmatpush3.bf16.msra.mxu1 %v5630_v15  ;;  %v5691_v15 = vld [vmem:[%s5893_s6 + $0x88] sm:$0xff]  }
  0x91   : > { %4927 = vmatprep.subr.bf16.mxu1 %v5636_v17 }
  0x93   : > { %4896 = vmatmul.mubr.bf16.gmra.mrb[4].mxu1 %v5629_v18  ;;  %v5714_v18 = vld [vmem:[#allocation2 + $0xf8] sm:$0xff]  }
  0x94   : > { %5104 = vmatmul.mubr.bf16.gmra.mrb[20].mxu0 %v5631_v19  ;;  %4899 = vmatprep.mubr.bf16.mxu1 %v5633_v20  ;;  %v5695_v19 = vld [vmem:[%s5893_s6 + $0x168] sm:$0xff]  }
  0x95   : > { %5107 = vmatprep.mubr.bf16.mxu0 %v5634_v21  ;;  %4928 = vmatpush3.bf16.msra.mxu1 %v5636_v17  ;;  %v5694_v17 = vld [vmem:[%s5893_s6 + $0xa0] sm:$0xff]   ;;  %v5697_v20 = vld [vmem:[%s5893_s6 + $0xa8] sm:$0xff]   ;;  %v5699_v21 = vld [vmem:[%s5893_s6 + $0x170] sm:$0xff]  }
  0x96   : > { %4929 = vmatprep.subr.bf16.mxu1 %v5642_v22 }
  0x99   : > { %4930 = vmatpush3.bf16.msra.mxu1 %v5642_v22  ;;  %v5700_v22 = vld [vmem:[%s5893_s6 + $0xb0] sm:$0xff]  }
  0x9a   : > { %4931 = vmatprep.subr.bf16.mxu1 %v5648_v24 }
  0x9b   : > { %4900 = vmatmul.mubr.bf16.gmra.mrb[8].mxu1 %v5635_v23  ;;  %v5704_v23 = vld [vmem:[#allocation2 + $0x208] sm:$0xff]  }
  0x9c   : > { %5108 = vmatmul.mubr.bf16.gmra.mrb[24].mxu0 %v5637_v25  ;;  %4903 = vmatprep.mubr.bf16.mxu1 %v5639_v26  ;;  %v5701_v25 = vld [vmem:[%s5893_s6 + $0x178] sm:$0xff]   ;;  %v5710_v26 = vld [vmem:[#allocation2 + $0x210] sm:$0xff]  }
  0x9d   : > { %5111 = vmatprep.mubr.bf16.mxu0 %v5640_v27  ;;  %4932 = vmatpush3.bf16.msra.mxu1 %v5648_v24  ;;  %v5769_v24 = vld [vmem:[#allocation2 + $0x100] sm:$0xff]   ;;  %v5703_v27 = vld [vmem:[%s5893_s6 + $0xb8] sm:$0xff]  }
  0x9e   : > { %4933 = vmatprep.subr.bf16.mxu1 %v5654_v28 }
  0xa1   : > { %4934 = vmatpush3.bf16.msra.mxu1 %v5654_v28  ;;  %v5705_v28 = vld [vmem:[%s5893_s6 + $0x180] sm:$0xff]  }
  0xa2   : > { %4935 = vmatprep.subr.bf16.mxu1 %v5660_v30 }
  0xa3   : > { %4904 = vmatmul.mubr.bf16.gmra.mrb[12].mxu1 %v5641_v29  ;;  %v5706_v29 = vld [vmem:[%s5893_s6 + $0xc0] sm:$0xff]  }
  0xa4   : > { %5112 = vmatmul.mubr.bf16.gmra.mrb[28].mxu0 %v5643_v31  ;;  %4907 = vmatprep.mubr.bf16.mxu1 %v5645_v32  ;;  %v5707_v31 = vld [vmem:[%s5893_s6 + $0x188] sm:$0xff]   ;;  %v5721_v32 = vld [vmem:[#allocation2 + $0x220] sm:$0xff]  }
  0xa5   : > { %5131 = vmatprep.mubr.bf16.mxu0 %v5646_v33  ;;  %4936 = vmatpush3.bf16.msra.mxu1 %v5660_v30  ;;  %v5716_v30 = vld [vmem:[#allocation2 + $0x218] sm:$0xff]   ;;  %v5709_v33 = vld [vmem:[%s5893_s6 + $0xc8] sm:$0xff]  }
  0xa6   : > { %4937 = vmatprep.subr.bf16.mxu1 %v5666_v34 }
  0xa9   : > { %4938 = vmatpush3.bf16.msra.mxu1 %v5666_v34  ;;  %v5711_v34 = vld [vmem:[%s5893_s6 + $0x190] sm:$0xff]  }
  0xaa   : > { %4971 = vmatprep.subr.bf16.mxu1 %v5946_v36 }
  0xab   : > { %4908 = vmatmul.mubr.bf16.gmra.mrb[16].mxu1 %v5647_v35  ;;  %v5712_v35 = vld [vmem:[%s5893_s6 + $0xd0] sm:$0xff]  }
  0xac   : > { %5132 = vmatmul.mubr.bf16.vlgmr.msra.gmra.mrb[0].mxu0 %v5649_v37  ;;  %4911 = vmatprep.mubr.bf16.mxu1 %v5651_v38  ;;  %v5713_v37 = vld [vmem:[%s5893_s6 + $0x198] sm:$0xff]   ;;  %v5731_v38 = vld [vmem:[#allocation2 + $0x230] sm:$0xff]  }
  0xad   : > { %5164 = vmatpush3.bf16.msra.mxu0 %v5650_v16  ;;  %5135 = vmatprep.mubr.bf16.mxu0 %v5652_v39  ;;  %v5693_v16 = vld [vmem:[%s5893_s6 + $0x160] sm:$0xff]   ;;  %v5715_v39 = vld [vmem:[%s5893_s6 + $0xd8] sm:$0xff]  }
  0xae   : > { %5165 = vmatprep.subr.bf16.mxu0 %v5656_v40 }
  0xb1   : > { %5166 = vmatpush3.bf16.msra.mxu0 %v5656_v40  ;;  %v5717_v40 = vld [vmem:[%s5893_s6 + $0x8] sm:$0xff]  }
  0xb2   : > { %5167 = vmatprep.subr.bf16.mxu0 %v5662_v42 }
  0xb3   : > { %4912 = vmatmul.mubr.bf16.gmra.mrb[20].mxu1 %v5653_v41  ;;  %v5718_v41 = vld [vmem:[%s5893_s6 + $0xe0] sm:$0xff]  }
  0xb4   : > { %5136 = vmatmul.mubr.bf16.gmra.mrb[4].mxu0 %v5655_v43  ;;  %4915 = vmatprep.mubr.bf16.mxu1 %v5657_v44  ;;  %v5719_v43 = vld [vmem:[%s5893_s6 + $0x10] sm:$0xff]   ;;  %v5720_v44 = vld [vmem:[%s5893_s6 + $0xe8] sm:$0xff]  }
  0xb5   : > { %5139 = vmatprep.mubr.bf16.mxu0 %v5658_v45  ;;  %5168 = vmatpush3.bf16.msra.mxu0 %v5662_v42  ;;  %v5736_v42 = vld [vmem:[#allocation2 + $0x238] sm:$0xff]  }
  0xb6   : > { %5169 = vmatprep.subr.bf16.mxu0 %v5668_v46  ;;  %v5722_v45 = vld [vmem:[%s5893_s6 + $0x18] sm:$0xff]  }
  0xb9   : > { %5170 = vmatpush3.bf16.msra.mxu0 %v5668_v46  ;;  %v5723_v46 = vld [vmem:[%s5893_s6 + $0xf0] sm:$0xff]  }
  0xba   : > { %5171 = vmatprep.subr.bf16.mxu0 %v5674_v48 }
  0xbb   : > { %4916 = vmatmul.mubr.bf16.gmra.mrb[24].mxu1 %v5659_v47  ;;  %v5770_v47 = vld [vmem:[#allocation2 + $0x108] sm:$0xff]  }
  0xbc   : > { %5140 = vmatmul.mubr.bf16.gmra.mrb[8].mxu0 %v5661_v49  ;;  %4919 = vmatprep.mubr.bf16.mxu1 %v5663_v50  ;;  %v5725_v49 = vld [vmem:[%s5893_s6 + $0xf8] sm:$0xff]   ;;  %v5727_v50 = vld [vmem:[%s5893_s6 + $0x28] sm:$0xff]  }
  0xbd   : > { %5143 = vmatprep.mubr.bf16.mxu0 %v5664_v51  ;;  %5172 = vmatpush3.bf16.msra.mxu0 %v5674_v48  ;;  %v5724_v48 = vld [vmem:[%s5893_s6 + $0x20] sm:$0xff]  }
  0xbe   : > { %5173 = vmatprep.subr.bf16.mxu0 %v5680_v52  ;;  %v5728_v51 = vld [vmem:[%s5893_s6 + $0x100] sm:$0xff]  }
  0xc1   : > { %5174 = vmatpush3.bf16.msra.mxu0 %v5680_v52  ;;  %v5771_v52 = vld [vmem:[#allocation2 + $0x110] sm:$0xff]  }
  0xc2   : > { %5175 = vmatprep.subr.bf16.mxu0 %v5686_v54 }
  0xc3   : > { %4920 = vmatmul.mubr.bf16.gmra.mrb[28].mxu1 %v5665_v53  ;;  %v5772_v53 = vld [vmem:[#allocation2 + $0x118] sm:$0xff]  }
  0xc4   : > { %5144 = vmatmul.mubr.bf16.gmra.mrb[12].mxu0 %v5667_v55  ;;  %4939 = vmatprep.mubr.bf16.mxu1 %v5669_v56  ;;  %v5730_v55 = vld [vmem:[%s5893_s6 + $0x108] sm:$0xff]   ;;  %v5732_v56 = vld [vmem:[%s5893_s6 + $0x38] sm:$0xff]  }
  0xc5   : > { %5147 = vmatprep.mubr.bf16.mxu0 %v5670_v57  ;;  %5176 = vmatpush3.bf16.msra.mxu0 %v5686_v54  ;;  %v5729_v54 = vld [vmem:[%s5893_s6 + $0x30] sm:$0xff]  }
  0xc6   : > { %5177 = vmatprep.subr.bf16.mxu0 %v5692_v58  ;;  %v5733_v57 = vld [vmem:[%s5893_s6 + $0x110] sm:$0xff]  }
  0xc9   : > { %5178 = vmatpush3.bf16.msra.mxu0 %v5692_v58  ;;  %v5773_v58 = vld [vmem:[#allocation2 + $0x120] sm:$0xff]  }
  0xca   : > { %5211 = vmatprep.subr.bf16.mxu0 %v5965_v60 }
  0xcb   : > { %4940 = vmatmul.mubr.bf16.vlgmr.msra.gmra.mrb[0].mxu1 %v5671_v59  ;;  %v5774_v59 = vld [vmem:[#allocation2 + $0x128] sm:$0xff]  }
  0xcc   : > { %5148 = vmatmul.mubr.bf16.gmra.mrb[16].mxu0 %v5673_v61  ;;  %4972 = vmatpush3.bf16.msra.mxu1 %v5946_v36  ;;  %v5726_v36 = vld [vmem:[#allocation2 + $0x228] sm:$0xff]   ;;  %v5735_v61 = vld [vmem:[%s5893_s6 + $0x118] sm:$0xff]  }
  0xcd   : > { %4943 = vmatprep.mubr.bf16.mxu1 %v5675_v62  ;;  %5151 = vmatprep.mubr.bf16.mxu0 %v5676_v63  ;;  %v5737_v62 = vld [vmem:[%s5893_s6 + $0x48] sm:$0xff]   ;;  %v5738_v63 = vld [vmem:[%s5893_s6 + $0x130] sm:$0xff]  }
  0xce   : > { %4973 = vmatprep.subr.bf16.mxu1 %v5678_v0 }
  0xd0   : > { %4974 = vmatpush3.bf16.msra.mxu1 %v5678_v0  ;;  %v5775_v0 = vld [vmem:[#allocation2 + $0x130] sm:$0xff]  }
  0xd1   : > { %4975 = vmatprep.subr.bf16.mxu1 %v5684_v1 }
  0xd3   : > { %4944 = vmatmul.mubr.bf16.gmra.mrb[4].mxu1 %v5677_v2  ;;  %v5739_v2 = vld [vmem:[%s5893_s6 + $0x50] sm:$0xff]  }
  0xd4   : > { %5152 = vmatmul.mubr.bf16.gmra.mrb[20].mxu0 %v5679_v3  ;;  %4947 = vmatprep.mubr.bf16.mxu1 %v5681_v4  ;;  %v5740_v3 = vld [vmem:[%s5893_s6 + $0x138] sm:$0xff]  }
  0xd5   : > { %5155 = vmatprep.mubr.bf16.mxu0 %v5682_v5  ;;  %4976 = vmatpush3.bf16.msra.mxu1 %v5684_v1  ;;  %v5776_v1 = vld [vmem:[#allocation2 + $0x138] sm:$0xff]   ;;  %v5742_v5 = vld [vmem:[%s5893_s6 + $0x140] sm:$0xff]  }
  0xd6   : > { %4977 = vmatprep.subr.bf16.mxu1 %v5690_v6  ;;  %v5741_v4 = vld [vmem:[%s5893_s6 + $0x58] sm:$0xff]  }
  0xd9   : > { %4978 = vmatpush3.bf16.msra.mxu1 %v5690_v6  ;;  %v5743_v6 = vld [vmem:[%s5893_s6 + $0x60] sm:$0xff]  }
  0xda   : > { %4979 = vmatprep.subr.bf16.mxu1 %v5696_v8 }
  0xdb   : > { %4948 = vmatmul.mubr.bf16.gmra.mrb[8].mxu1 %v5683_v7  ;;  %v5744_v7 = vld [vmem:[%s5893_s6 + $0x148] sm:$0xff]  }
  0xdc   : > { %5156 = vmatmul.mubr.bf16.gmra.mrb[24].mxu0 %v5685_v9  ;;  %4951 = vmatprep.mubr.bf16.mxu1 %v5687_v10  ;;  %v5746_v9 = vld [vmem:[%s5893_s6 + $0x150] sm:$0xff]  }
  0xdd   : > { %5159 = vmatprep.mubr.bf16.mxu0 %v5688_v11  ;;  %4980 = vmatpush3.bf16.msra.mxu1 %v5696_v8  ;;  %v5745_v8 = vld [vmem:[%s5893_s6 + $0x68] sm:$0xff]   ;;  %v5747_v10 = vld [vmem:[%s5893_s6 + $0x70] sm:$0xff]   ;;  %v5748_v11 = vld [vmem:[%s5893_s6 + $0x158] sm:$0xff]  }
  0xde   : > { %4981 = vmatprep.subr.bf16.mxu1 %v5702_v12 }
  0xe1   : > { %4982 = vmatpush3.bf16.msra.mxu1 %v5702_v12  ;;  %v5749_v12 = vld [vmem:[%s5893_s6 + $0x78] sm:$0xff]  }
  0xe2   : > { %4983 = vmatprep.subr.bf16.mxu1 %v5708_v14 }
  0xe3   : > { %4952 = vmatmul.mubr.bf16.gmra.mrb[12].mxu1 %v5689_v13  ;;  %v5750_v13 = vld [vmem:[%s5893_s6 + $0x160] sm:$0xff]  }
  0xe4   : > { %5160 = vmatmul.mubr.bf16.gmra.mrb[28].mxu0 %v5691_v15  ;;  %4955 = vmatprep.mubr.bf16.mxu1 %v5693_v16  ;;  %v5752_v15 = vld [vmem:[%s5893_s6 + $0x168] sm:$0xff]   ;;  %v5753_v16 = vld [vmem:[%s5893_s6 + $0xd8] sm:$0xff]  }
  0xe5   : > { %5179 = vmatprep.mubr.bf16.mxu0 %v5694_v17  ;;  %4984 = vmatpush3.bf16.msra.mxu1 %v5708_v14  ;;  %v5751_v14 = vld [vmem:[%s5893_s6 + $0x80] sm:$0xff]   ;;  %v5754_v17 = vld [vmem:[%s5893_s6 + $0x170] sm:$0xff]  }
  0xe6   : > { %4985 = vmatprep.subr.bf16.mxu1 %v5714_v18 }
  0xe9   : > { %4986 = vmatpush3.bf16.msra.mxu1 %v5714_v18  ;;  %v5755_v18 = vld [vmem:[%s5893_s6 + $0xe0] sm:$0xff]  }
  0xea   : > { %5259 = vmatprep.subr.bf16.mxu1 %v5769_v24 }
  0xeb   : > { %4956 = vmatmul.mubr.bf16.gmra.mrb[16].mxu1 %v5695_v19  ;;  %v5756_v19 = vld [vmem:[%s5893_s6 + $0x178] sm:$0xff]  }
  0xec   : > { %5180 = vmatmul.mubr.bf16.vlgmr.msra.gmra.mrb[0].mxu0 %v5697_v20  ;;  %4959 = vmatprep.mubr.bf16.mxu1 %v5699_v21  ;;  %v5757_v20 = vld [vmem:[%s5893_s6 + $0xe8] sm:$0xff]   ;;  %v5758_v21 = vld [vmem:[%s5893_s6 + $0x180] sm:$0xff]  }
  0xed   : > { %5212 = vmatpush3.bf16.msra.mxu0 %v5965_v60  ;;  %5183 = vmatprep.mubr.bf16.mxu0 %v5700_v22  ;;  %v5734_v60 = vld [vmem:[%s5893_s6 + $0x40] sm:$0xff]   ;;  %v5759_v22 = vld [vmem:[%s5893_s6 + $0xf0] sm:$0xff]  }
  0xee   : > { %5213 = vmatprep.subr.bf16.mxu0 %v5704_v23 }
  0xf1   : > { %5214 = vmatpush3.bf16.msra.mxu0 %v5704_v23  ;;  %v5760_v23 = vld [vmem:[%s5893_s6 + $0x188] sm:$0xff]  }
  0xf2   : > { %5215 = vmatprep.subr.bf16.mxu0 %v5710_v26 }
  0xf3   : > { %4960 = vmatmul.mubr.bf16.gmra.mrb[20].mxu1 %v5701_v25  ;;  %v5762_v25 = vld [vmem:[%s5893_s6 + $0x190] sm:$0xff]  }
  0xf4   : > { %5184 = vmatmul.mubr.bf16.gmra.mrb[4].mxu0 %v5703_v27  ;;  %4963 = vmatprep.mubr.bf16.mxu1 %v5705_v28  ;;  %v5764_v27 = vld [vmem:[%s5893_s6 + $0x198] sm:$0xff]   ;;  %v5765_v28 = vld [vmem:[%s5893_s6 + $0x108] sm:$0xff]  }
  0xf5   : > { %5187 = vmatprep.mubr.bf16.mxu0 %v5706_v29  ;;  %5216 = vmatpush3.bf16.msra.mxu0 %v5710_v26  ;;  %v5763_v26 = vld [vmem:[%s5893_s6 + $0x100] sm:$0xff]  }
  0xf6   : > { %5217 = vmatprep.subr.bf16.mxu0 %v5716_v30  ;;  %v5766_v29 = vld [vmem:[%s5893_s6 + $0x1a0] sm:$0xff]  }
  0xf9   : > { %5218 = vmatpush3.bf16.msra.mxu0 %v5716_v30  ;;  %v5767_v30 = vld [vmem:[%s5893_s6 + $0x110] sm:$0xff]  }
  0xfa   : > { %5219 = vmatprep.subr.bf16.mxu0 %v5721_v32 }
  0xfb   : > { %4964 = vmatmul.mubr.bf16.gmra.mrb[24].mxu1 %v5707_v31  ;;  %v5768_v31 = vld [vmem:[%s5893_s6 + $0x1a8] sm:$0xff]  }
  0xfc   : > { %5188 = vmatmul.mubr.bf16.gmra.mrb[8].mxu0 %v5709_v33  ;;  %4967 = vmatprep.mubr.bf16.mxu1 %v5711_v34 }
  0xfd   : > { %5191 = vmatprep.mubr.bf16.mxu0 %v5712_v35  ;;  %5220 = vmatpush3.bf16.msra.mxu0 %v5721_v32 }
  0xfe   : > { %5221 = vmatprep.subr.bf16.mxu0 %v5726_v36 }
 0x101   : > { %5222 = vmatpush3.bf16.msra.mxu0 %v5726_v36 }
 0x102   : > { %5223 = vmatprep.subr.bf16.mxu0 %v5731_v38 }
 0x103   : > { %4968 = vmatmul.mubr.bf16.gmra.mrb[28].mxu1 %v5713_v37 }
 0x104   : > { %5192 = vmatmul.mubr.bf16.gmra.mrb[12].mxu0 %v5715_v39  ;;  %4987 = vmatprep.mubr.bf16.mxu1 %v5717_v40 }
 0x105   : > { %5195 = vmatprep.mubr.bf16.mxu0 %v5718_v41  ;;  %5224 = vmatpush3.bf16.msra.mxu0 %v5731_v38 }
 0x106   : > { %5225 = vmatprep.subr.bf16.mxu0 %v5736_v42 }
 0x109   : > { %5226 = vmatpush3.bf16.msra.mxu0 %v5736_v42 }
 0x10b   : > { %4988 = vmatmul.mubr.bf16.vlgmr.msra.gmra.mrb[0].mxu1 %v5719_v43 }
 0x10c   : > { %5196 = vmatmul.mubr.bf16.gmra.mrb[16].mxu0 %v5720_v44  ;;  %5267 = vmatpush3.bf16.msra.mxu1 %v5769_v24  ;;  %v5761_v24 = vld [vmem:[%s5893_s6 + $0xf8] sm:$0xff]  }
 0x10d   : > { %4991 = vmatprep.mubr.bf16.mxu1 %v5722_v45  ;;  %5199 = vmatprep.mubr.bf16.mxu0 %v5723_v46 }
 0x10e   : > { %5260 = vmatprep.subr.bf16.mxu1 %v5770_v47 }
 0x110   : > { %5268 = vmatpush3.bf16.msra.mxu1 %v5770_v47 }
 0x111   : > { %5261 = vmatprep.subr.bf16.mxu1 %v5771_v52 }
 0x113   : > { %4992 = vmatmul.mubr.bf16.gmra.mrb[4].mxu1 %v5724_v48 }
 0x114   : > { %5200 = vmatmul.mubr.bf16.gmra.mrb[20].mxu0 %v5725_v49  ;;  %4995 = vmatprep.mubr.bf16.mxu1 %v5727_v50  ;;  %v6066_v49 = vld [vmem:[%s6135_s2] ss:$0 sm:$0xff] }
 0x115   : > { %5203 = vmatprep.mubr.bf16.mxu0 %v5728_v51  ;;  %5269 = vmatpush3.bf16.msra.mxu1 %v5771_v52 }
 0x116   : > { %5262 = vmatprep.subr.bf16.mxu1 %v5772_v53 }
 0x119   : > { %5270 = vmatpush3.bf16.msra.mxu1 %v5772_v53 }
 0x11a   : > { %5263 = vmatprep.subr.bf16.mxu1 %v5773_v58 }
 0x11b   : > { %4996 = vmatmul.mubr.bf16.gmra.mrb[8].mxu1 %v5729_v54 }
 0x11c   : > { %5204 = vmatmul.mubr.bf16.gmra.mrb[24].mxu0 %v5730_v55  ;;  %4999 = vmatprep.mubr.bf16.mxu1 %v5732_v56 }
 0x11d   : > { %5207 = vmatprep.mubr.bf16.mxu0 %v5733_v57  ;;  %5271 = vmatpush3.bf16.msra.mxu1 %v5773_v58 }
 0x11e   : > { %5264 = vmatprep.subr.bf16.mxu1 %v5774_v59 }
 0x121   : > { %5272 = vmatpush3.bf16.msra.mxu1 %v5774_v59 }
 0x122   : > { %5265 = vmatprep.subr.bf16.mxu1 %v5775_v0 }
 0x123   : > { %5000 = vmatmul.mubr.bf16.gmra.mrb[12].mxu1 %v5734_v60 }
 0x124   : > { %5208 = vmatmul.mubr.bf16.gmra.mrb[28].mxu0 %v5735_v61  ;;  %5003 = vmatprep.mubr.bf16.mxu1 %v5737_v62 }
 0x125   : > { %5227 = vmatprep.mubr.bf16.mxu0 %v5738_v63  ;;  %5273 = vmatpush3.bf16.msra.mxu1 %v5775_v0 }
 0x126   : > { %5266 = vmatprep.subr.bf16.mxu1 %v5776_v1 }
 0x129   : > { %5274 = vmatpush3.bf16.msra.mxu1 %v5776_v1 }
 0x12b   : > { %5004 = vmatmul.mubr.bf16.gmra.mrb[16].mxu1 %v5739_v2 }
 0x12c   : > { %5228 = vmatmul.mubr.bf16.vlgmr.msra.gmra.mrb[0].mxu0 %v5740_v3  ;;  %5007 = vmatprep.mubr.bf16.mxu1 %v5741_v4 }
 0x12d   : > { %5231 = vmatprep.mubr.bf16.mxu0 %v5742_v5 }
 0x133   : > { %5008 = vmatmul.mubr.bf16.gmra.mrb[20].mxu1 %v5743_v6 }
 0x134   : > { %5232 = vmatmul.mubr.bf16.gmra.mrb[4].mxu0 %v5744_v7  ;;  %5011 = vmatprep.mubr.bf16.mxu1 %v5745_v8 }
 0x135   : > { %5235 = vmatprep.mubr.bf16.mxu0 %v5746_v9 }
 0x13b   : > { %5012 = vmatmul.mubr.bf16.gmra.mrb[24].mxu1 %v5747_v10 }
 0x13c   : > { %5236 = vmatmul.mubr.bf16.gmra.mrb[8].mxu0 %v5748_v11  ;;  %5015 = vmatprep.mubr.bf16.mxu1 %v5749_v12 }
 0x13d   : > { %5239 = vmatprep.mubr.bf16.mxu0 %v5750_v13 }
 0x143   : > { %5016 = vmatmul.mubr.bf16.gmra.mrb[28].mxu1 %v5751_v14 }
 0x144   : > { %5240 = vmatmul.mubr.bf16.gmra.mrb[12].mxu0 %v5752_v15  ;;  %5051 = vmatprep.mubr.bf16.mxu1 %v5753_v16 }
 0x145   : > { %5243 = vmatprep.mubr.bf16.mxu0 %v5754_v17 }
 0x14b   : > { %5052 = vmatmul.mubr.bf16.vlgmr.msra.gmra.mrb[16].mxu1 %v5755_v18 }
 0x14c   : > { %5244 = vmatmul.mubr.bf16.gmra.mrb[16].mxu0 %v5756_v19  ;;  %5055 = vmatprep.mubr.bf16.mxu1 %v5757_v20 }
 0x14d   : > { %5247 = vmatprep.mubr.bf16.mxu0 %v5758_v21 }
 0x153   : > { %5056 = vmatmul.mubr.bf16.gmra.mrb[20].mxu1 %v5759_v22 }
 0x154   : > { %5248 = vmatmul.mubr.bf16.gmra.mrb[20].mxu0 %v5760_v23  ;;  %5059 = vmatprep.mubr.bf16.mxu1 %v5761_v24 }
 0x155   : > { %5251 = vmatprep.mubr.bf16.mxu0 %v5762_v25 }
 0x15b   : > { %5060 = vmatmul.mubr.bf16.gmra.mrb[24].mxu1 %v5763_v26 }
 0x15c   : > { %5252 = vmatmul.mubr.bf16.gmra.mrb[24].mxu0 %v5764_v27  ;;  %5063 = vmatprep.mubr.bf16.mxu1 %v5765_v28 }
 0x15d   : > { %5255 = vmatprep.mubr.bf16.mxu0 %v5766_v29 }
 0x163   : > { %5064 = vmatmul.mubr.bf16.gmra.mrb[28].mxu1 %v5767_v30 }
 0x164   : > { %5256 = vmatmul.mubr.bf16.gmra.mrb[28].mxu0 %v5768_v31 }
 0x1de   : > { %v4989_v32 = vpop.f32.mrb[0].mxu1 }
 0x1df   : > { %v1510_v33 = vpop.f32.mrb[1].mxu1 }
 0x1e0   : > { %v4990_v34 = vpop.f32.mrb[2].mxu1 }
 0x1e1   : > { %v1513_v35 = vpop.f32.mrb[3].mxu1 }
 0x1e6   : > { %v4993_v36 = vpop.f32.mrb[4].mxu1 }
 0x1e7   : > { %v1526_v37 = vpop.f32.mrb[5].mxu1 }
 0x1e8   : > { %v4994_v38 = vpop.f32.mrb[6].mxu1 }
 0x1e9   : > { %v1529_v39 = vpop.f32.mrb[7].mxu1 }
 0x1ee   : > { %v6047_v40 = vpop.f32.mrb[8].mxu1 }
 0x1ef   : > { %v6049_v41 = vpop.f32.mrb[9].mxu1 }
 0x1f0   : > { %v6051_v42 = vpop.f32.mrb[10].mxu1 }
 0x1f1   : > { %v6053_v43 = vpop.f32.mrb[11].mxu1 }
 0x1f6   : > { %v6055_v44 = vpop.f32.mrb[12].mxu1 }
 0x1f7   : > { %v6057_v45 = vpop.f32.mrb[13].mxu1 }
 0x1f8   : > { %v6059_v46 = vpop.f32.mrb[14].mxu1 }
 0x1f9   : > { %v6061_v47 = vpop.f32.mrb[15].mxu1 }
 0x1ff   : > { %v5229_v48 = vpop.f32.mrb[0].mxu0 }
 0x200   : > { %v5275_v50 = vadd.f32 %v5229_v48, %v4989_v32  ;;  %v3445_v51 = vpop.f32.mrb[1].mxu0 }
 0x201   : > { %v5276_v52 = vadd.f32 %v3445_v51, %v1510_v33  ;;  %v5230_v53 = vpop.f32.mrb[2].mxu0 }
 0x202   : > { %v3613_v54 = vadd.f32 %v5275_v50, %v6066_v49  ;;  %v5277_v55 = vadd.f32 %v5230_v53, %v4990_v34  ;;  %v3448_v56 = vpop.f32.mrb[3].mxu0 }
 0x203   : > { %v3611_v57 = vadd.f32 %v5276_v52, %v6066_v49  ;;  %v5278_v58 = vadd.f32 %v3448_v56, %v1513_v35 }
 0x204   : > { %v3677_v59 = vmul.f32 0.2, %v3613_v54  ;;  %v3614_v60 = vadd.f32 %v5277_v55, %v6066_v49  ;;  %vm3645_vm0 = vcmp.ge.f32.partialorder %v3613_v54, 0.0 }
 0x205   : > { %v3675_v61 = vmul.f32 0.2, %v3611_v57  ;;  %v3612_v62 = vadd.f32 %v5278_v58, %v6066_v49  ;;  %vm3643_vm1 = vcmp.ge.f32.partialorder %v3611_v57, 0.0 }
 0x206   : > { %vm3646_vm2 = vcmp.ge.f32.partialorder %v3614_v60, 0.0  ;;  %v3678_v63 = vmul.f32 0.2, %v3614_v60  ;;  %v3709_v2 = vsel %vm3645_vm0, %v3613_v54, %v3677_v59 }
 0x207   : > { %vm3644_vm3 = vcmp.ge.f32.partialorder %v3612_v62, 0.0  ;;  %v3676_v0 = vmul.f32 0.2, %v3612_v62  ;;  %v5233_v1 = vpop.f32.mrb[4].mxu0  ;;  %v3707_v6 = vsel %vm3643_vm1, %v3611_v57, %v3675_v61 }
 0x208   : > { %v3710_v3 = vsel %vm3646_vm2, %v3614_v60, %v3678_v63  ;;  %v5279_v4 = vadd.f32 %v5233_v1, %v4993_v36  ;;  %v3461_v5 = vpop.f32.mrb[5].mxu0 }
 0x209   : > { %v4524_v7 = vpack.c.bf16 %v3710_v3, %v3709_v2  ;;  %v3708_v8 = vsel %vm3644_vm3, %v3612_v62, %v3676_v0  ;;  %v5280_v9 = vadd.f32 %v3461_v5, %v1526_v37  ;;  %v5234_v10 = vpop.f32.mrb[6].mxu0 }
 0x20a   : > { %v4519_v11 = vpack.c.bf16 %v3708_v8, %v3707_v6  ;;  %v3617_v12 = vadd.f32 %v5279_v4, %v6066_v49  ;;  %v5281_v13 = vadd.f32 %v5234_v10, %v4994_v38  ;;  %v3464_v14 = vpop.f32.mrb[7].mxu0 }
 0x20b   : > { %4596 = vst [vmem:[%s6076_s14 + $0x8] sm:$0xff] %v4524_v7   ;;  %v3615_v15 = vadd.f32 %v5280_v9, %v6066_v49  ;;  %v5282_v16 = vadd.f32 %v3464_v14, %v1529_v39 }
 0x20c   : > { %4520 = vst [vmem:[%s6076_s14] sm:$0xff] %v4519_v11   ;;  %v3681_v17 = vmul.f32 0.2, %v3617_v12  ;;  %v3618_v18 = vadd.f32 %v5281_v13, %v6066_v49  ;;  %vm3649_vm4 = vcmp.ge.f32.partialorder %v3617_v12, 0.0 }
 0x20d   : > { %v3679_v19 = vmul.f32 0.2, %v3615_v15  ;;  %v3616_v20 = vadd.f32 %v5282_v16, %v6066_v49  ;;  %vm3647_vm5 = vcmp.ge.f32.partialorder %v3615_v15, 0.0 }
 0x20e   : > { %vm3650_vm6 = vcmp.ge.f32.partialorder %v3618_v18, 0.0  ;;  %v3682_v21 = vmul.f32 0.2, %v3618_v18  ;;  %v3713_v24 = vsel %vm3649_vm4, %v3617_v12, %v3681_v17 }
 0x20f   : > { %vm3648_vm7 = vcmp.ge.f32.partialorder %v3616_v20, 0.0  ;;  %v3680_v22 = vmul.f32 0.2, %v3616_v20  ;;  %v5237_v23 = vpop.f32.mrb[8].mxu0  ;;  %v3711_v28 = vsel %vm3647_vm5, %v3615_v15, %v3679_v19 }
 0x210   : > { %v3714_v25 = vsel %vm3650_vm6, %v3618_v18, %v3682_v21  ;;  %v5283_v26 = vadd.f32 %v5237_v23, %v6047_v40  ;;  %v3477_v27 = vpop.f32.mrb[9].mxu0 }
 0x211   : > { %v4534_v29 = vpack.c.bf16 %v3714_v25, %v3713_v24  ;;  %v3712_v30 = vsel %vm3648_vm7, %v3616_v20, %v3680_v22  ;;  %v5284_v31 = vadd.f32 %v3477_v27, %v6049_v41  ;;  %v5238_v32 = vpop.f32.mrb[10].mxu0 }
 0x212   : > { %v4529_v33 = vpack.c.bf16 %v3712_v30, %v3711_v28  ;;  %v3621_v34 = vadd.f32 %v5283_v26, %v6066_v49  ;;  %v5285_v35 = vadd.f32 %v5238_v32, %v6051_v42  ;;  %v3480_v36 = vpop.f32.mrb[11].mxu0 }
 0x213   : > { %4598 = vst [vmem:[%s6076_s14 + $0x18] sm:$0xff] %v4534_v29   ;;  %v3619_v37 = vadd.f32 %v5284_v31, %v6066_v49  ;;  %v5286_v38 = vadd.f32 %v3480_v36, %v6053_v43 }
 0x214   : > { %4597 = vst [vmem:[%s6076_s14 + $0x10] sm:$0xff] %v4529_v33   ;;  %v3685_v39 = vmul.f32 0.2, %v3621_v34  ;;  %v3622_v40 = vadd.f32 %v5285_v35, %v6066_v49  ;;  %vm3653_vm8 = vcmp.ge.f32.partialorder %v3621_v34, 0.0 }
 0x215   : > { %v3683_v48 = vmul.f32 0.2, %v3619_v37  ;;  %v3620_v41 = vadd.f32 %v5286_v38, %v6066_v49  ;;  %vm3651_vm9 = vcmp.ge.f32.partialorder %v3619_v37, 0.0 }
 0x216   : > { %vm3654_vm10 = vcmp.ge.f32.partialorder %v3622_v40, 0.0  ;;  %v3686_v50 = vmul.f32 0.2, %v3622_v40  ;;  %v3717_v52 = vsel %vm3653_vm8, %v3621_v34, %v3685_v39 }
 0x217   : > { %vm3652_vm11 = vcmp.ge.f32.partialorder %v3620_v41, 0.0  ;;  %v3684_v42 = vmul.f32 0.2, %v3620_v41  ;;  %v5241_v51 = vpop.f32.mrb[12].mxu0  ;;  %v3715_v55 = vsel %vm3651_vm9, %v3619_v37, %v3683_v48 }
 0x218   : > { %v3718_v53 = vsel %vm3654_vm10, %v3622_v40, %v3686_v50  ;;  %v5287_v43 = vadd.f32 %v5241_v51, %v6055_v44  ;;  %v3493_v54 = vpop.f32.mrb[13].mxu0 }
 0x219   : > { %v4544_v56 = vpack.c.bf16 %v3718_v53, %v3717_v52  ;;  %v3716_v57 = vsel %vm3652_vm11, %v3620_v41, %v3684_v42  ;;  %v5288_v58 = vadd.f32 %v3493_v54, %v6057_v45  ;;  %v5242_v59 = vpop.f32.mrb[14].mxu0 }
 0x21a   : > { %v4539_v60 = vpack.c.bf16 %v3716_v57, %v3715_v55  ;;  %v3625_v61 = vadd.f32 %v5287_v43, %v6066_v49  ;;  %v5289_v62 = vadd.f32 %v5242_v59, %v6059_v46  ;;  %v3496_v63 = vpop.f32.mrb[15].mxu0 }
 0x21b   : > { %4600 = vst [vmem:[%s6076_s14 + $0x28] sm:$0xff] %v4544_v56   ;;  %v3623_v0 = vadd.f32 %v5288_v58, %v6066_v49  ;;  %v5290_v1 = vadd.f32 %v3496_v63, %v6061_v47 }
 0x21c   : > { %4599 = vst [vmem:[%s6076_s14 + $0x20] sm:$0xff] %v4539_v60   ;;  %v3689_v44 = vmul.f32 0.2, %v3625_v61  ;;  %v3626_v2 = vadd.f32 %v5289_v62, %v6066_v49  ;;  %vm3657_vm12 = vcmp.ge.f32.partialorder %v3625_v61, 0.0 }
 0x21d   : > { %v3687_v3 = vmul.f32 0.2, %v3623_v0  ;;  %v3624_v45 = vadd.f32 %v5290_v1, %v6066_v49  ;;  %vm3655_vm13 = vcmp.ge.f32.partialorder %v3623_v0, 0.0 }
 0x21e   : > { %vm3658_vm14 = vcmp.ge.f32.partialorder %v3626_v2, 0.0  ;;  %v3690_v4 = vmul.f32 0.2, %v3626_v2  ;;  %v5053_v5 = vpop.f32.mrb[16].mxu1  ;;  %v3721_v8 = vsel %vm3657_vm12, %v3625_v61, %v3689_v44 }
 0x21f   : > { %vm3656_vm15 = vcmp.ge.f32.partialorder %v3624_v45, 0.0  ;;  %v3688_v46 = vmul.f32 0.2, %v3624_v45  ;;  %v5245_v6 = vpop.f32.mrb[16].mxu0  ;;  %v1961_v7 = vpop.f32.mrb[17].mxu1  ;;  %v3719_v12 = vsel %vm3655_vm13, %v3623_v0, %v3687_v3 }
 0x220   : > { %v3722_v9 = vsel %vm3658_vm14, %v3626_v2, %v3690_v4  ;;  %v5291_v47 = vadd.f32 %v5245_v6, %v5053_v5  ;;  %v3509_v10 = vpop.f32.mrb[17].mxu0  ;;  %v5054_v11 = vpop.f32.mrb[18].mxu1 }
 0x221   : > { %v4554_v13 = vpack.c.bf16 %v3722_v9, %v3721_v8  ;;  %v3720_v14 = vsel %vm3656_vm15, %v3624_v45, %v3688_v46  ;;  %v5292_v15 = vadd.f32 %v3509_v10, %v1961_v7  ;;  %v5246_v16 = vpop.f32.mrb[18].mxu0  ;;  %v1964_v17 = vpop.f32.mrb[19].mxu1 }
 0x222   : > { %v4549_v18 = vpack.c.bf16 %v3720_v14, %v3719_v12  ;;  %v3629_v19 = vadd.f32 %v5291_v47, %v6066_v49  ;;  %v5293_v20 = vadd.f32 %v5246_v16, %v5054_v11  ;;  %v3512_v21 = vpop.f32.mrb[19].mxu0 }
 0x223   : > { %4602 = vst [vmem:[%s6076_s14 + $0x38] sm:$0xff] %v4554_v13   ;;  %v3627_v22 = vadd.f32 %v5292_v15, %v6066_v49  ;;  %v5294_v23 = vadd.f32 %v3512_v21, %v1964_v17 }
 0x224   : > { %4601 = vst [vmem:[%s6076_s14 + $0x30] sm:$0xff] %v4549_v18   ;;  %v3693_v24 = vmul.f32 0.2, %v3629_v19  ;;  %v3630_v25 = vadd.f32 %v5293_v20, %v6066_v49  ;;  %vm3661_vm0 = vcmp.ge.f32.partialorder %v3629_v19, 0.0 }
 0x225   : > { %v3691_v26 = vmul.f32 0.2, %v3627_v22  ;;  %v3628_v27 = vadd.f32 %v5294_v23, %v6066_v49  ;;  %vm3659_vm1 = vcmp.ge.f32.partialorder %v3627_v22, 0.0 }
 0x226   : > { %vm3662_vm2 = vcmp.ge.f32.partialorder %v3630_v25, 0.0  ;;  %v3694_v28 = vmul.f32 0.2, %v3630_v25  ;;  %v5057_v29 = vpop.f32.mrb[20].mxu1  ;;  %v3725_v33 = vsel %vm3661_vm0, %v3629_v19, %v3693_v24 }
 0x227   : > { %vm3660_vm3 = vcmp.ge.f32.partialorder %v3628_v27, 0.0  ;;  %v3692_v30 = vmul.f32 0.2, %v3628_v27  ;;  %v5249_v31 = vpop.f32.mrb[20].mxu0  ;;  %v1977_v32 = vpop.f32.mrb[21].mxu1  ;;  %v3723_v38 = vsel %vm3659_vm1, %v3627_v22, %v3691_v26 }
 0x228   : > { %v3726_v34 = vsel %vm3662_vm2, %v3630_v25, %v3694_v28  ;;  %v5295_v35 = vadd.f32 %v5249_v31, %v5057_v29  ;;  %v3525_v36 = vpop.f32.mrb[21].mxu0  ;;  %v5058_v37 = vpop.f32.mrb[22].mxu1 }
 0x229   : > { %v4564_v39 = vpack.c.bf16 %v3726_v34, %v3725_v33  ;;  %v3724_v40 = vsel %vm3660_vm3, %v3628_v27, %v3692_v30  ;;  %v5296_v48 = vadd.f32 %v3525_v36, %v1977_v32  ;;  %v5250_v41 = vpop.f32.mrb[22].mxu0  ;;  %v1980_v50 = vpop.f32.mrb[23].mxu1 }
 0x22a   : > { %v4559_v42 = vpack.c.bf16 %v3724_v40, %v3723_v38  ;;  %v3633_v51 = vadd.f32 %v5295_v35, %v6066_v49  ;;  %v5297_v52 = vadd.f32 %v5250_v41, %v5058_v37  ;;  %v3528_v53 = vpop.f32.mrb[23].mxu0 }
 0x22b   : > { %4604 = vst [vmem:[%s6076_s14 + $0x48] sm:$0xff] %v4564_v39   ;;  %v3631_v43 = vadd.f32 %v5296_v48, %v6066_v49  ;;  %v5298_v54 = vadd.f32 %v3528_v53, %v1980_v50 }
 0x22c   : > { %4603 = vst [vmem:[%s6076_s14 + $0x40] sm:$0xff] %v4559_v42   ;;  %v3697_v55 = vmul.f32 0.2, %v3633_v51  ;;  %v3634_v56 = vadd.f32 %v5297_v52, %v6066_v49  ;;  %vm3665_vm4 = vcmp.ge.f32.partialorder %v3633_v51, 0.0 }
 0x22d   : > { %v3695_v57 = vmul.f32 0.2, %v3631_v43  ;;  %v3632_v58 = vadd.f32 %v5298_v54, %v6066_v49  ;;  %vm3663_vm5 = vcmp.ge.f32.partialorder %v3631_v43, 0.0 }
 0x22e   : > { %vm3666_vm6 = vcmp.ge.f32.partialorder %v3634_v56, 0.0  ;;  %v3698_v59 = vmul.f32 0.2, %v3634_v56  ;;  %v5061_v60 = vpop.f32.mrb[24].mxu1  ;;  %v3729_v0 = vsel %vm3665_vm4, %v3633_v51, %v3697_v55 }
 0x22f   : > { %vm3664_vm7 = vcmp.ge.f32.partialorder %v3632_v58, 0.0  ;;  %v3696_v61 = vmul.f32 0.2, %v3632_v58  ;;  %v5253_v62 = vpop.f32.mrb[24].mxu0  ;;  %v1993_v63 = vpop.f32.mrb[25].mxu1  ;;  %v3727_v45 = vsel %vm3663_vm5, %v3631_v43, %v3695_v57 }
 0x230   : > { %v3730_v1 = vsel %vm3666_vm6, %v3634_v56, %v3698_v59  ;;  %v5299_v44 = vadd.f32 %v5253_v62, %v5061_v60  ;;  %v3541_v2 = vpop.f32.mrb[25].mxu0  ;;  %v5062_v3 = vpop.f32.mrb[26].mxu1 }
 0x231   : > { %v4574_v4 = vpack.c.bf16 %v3730_v1, %v3729_v0  ;;  %v3728_v5 = vsel %vm3664_vm7, %v3632_v58, %v3696_v61  ;;  %v5300_v46 = vadd.f32 %v3541_v2, %v1993_v63  ;;  %v5254_v6 = vpop.f32.mrb[26].mxu0  ;;  %v1996_v7 = vpop.f32.mrb[27].mxu1 }
 0x232   : > { %v4569_v8 = vpack.c.bf16 %v3728_v5, %v3727_v45  ;;  %v3637_v9 = vadd.f32 %v5299_v44, %v6066_v49  ;;  %v5301_v47 = vadd.f32 %v5254_v6, %v5062_v3  ;;  %v3544_v10 = vpop.f32.mrb[27].mxu0 }
 0x233   : > { %4606 = vst [vmem:[%s6076_s14 + $0x58] sm:$0xff] %v4574_v4   ;;  %v3635_v11 = vadd.f32 %v5300_v46, %v6066_v49  ;;  %v5302_v12 = vadd.f32 %v3544_v10, %v1996_v7 }
 0x234   : > { %4605 = vst [vmem:[%s6076_s14 + $0x50] sm:$0xff] %v4569_v8   ;;  %v3701_v13 = vmul.f32 0.2, %v3637_v9  ;;  %v3638_v14 = vadd.f32 %v5301_v47, %v6066_v49  ;;  %vm3669_vm8 = vcmp.ge.f32.partialorder %v3637_v9, 0.0 }
 0x235   : > { %v3699_v15 = vmul.f32 0.2, %v3635_v11  ;;  %v3636_v16 = vadd.f32 %v5302_v12, %v6066_v49  ;;  %vm3667_vm9 = vcmp.ge.f32.partialorder %v3635_v11, 0.0 }
 0x236   : > { %vm3670_vm10 = vcmp.ge.f32.partialorder %v3638_v14, 0.0  ;;  %v3702_v17 = vmul.f32 0.2, %v3638_v14  ;;  %v5065_v18 = vpop.f32.mrb[28].mxu1  ;;  %v3733_v22 = vsel %vm3669_vm8, %v3637_v9, %v3701_v13 }
 0x237   : > { %vm3668_vm11 = vcmp.ge.f32.partialorder %v3636_v16, 0.0  ;;  %v3700_v19 = vmul.f32 0.2, %v3636_v16  ;;  %v5257_v20 = vpop.f32.mrb[28].mxu0  ;;  %v2009_v21 = vpop.f32.mrb[29].mxu1  ;;  %v3731_v27 = vsel %vm3667_vm9, %v3635_v11, %v3699_v15 }
 0x238   : > { %v3734_v23 = vsel %vm3670_vm10, %v3638_v14, %v3702_v17  ;;  %v5303_v24 = vadd.f32 %v5257_v20, %v5065_v18  ;;  %v3557_v25 = vpop.f32.mrb[29].mxu0  ;;  %v5066_v26 = vpop.f32.mrb[30].mxu1 }
 0x239   : > { %v4584_v28 = vpack.c.bf16 %v3734_v23, %v3733_v22  ;;  %v3732_v29 = vsel %vm3668_vm11, %v3636_v16, %v3700_v19  ;;  %v5304_v30 = vadd.f32 %v3557_v25, %v2009_v21  ;;  %v5258_v31 = vpop.f32.mrb[30].mxu0  ;;  %v2012_v32 = vpop.f32.mrb[31].mxu1 }
 0x23a   : > { %v4579_v33 = vpack.c.bf16 %v3732_v29, %v3731_v27  ;;  %v3641_v34 = vadd.f32 %v5303_v24, %v6066_v49  ;;  %v5305_v35 = vadd.f32 %v5258_v31, %v5066_v26  ;;  %v3560_v36 = vpop.f32.mrb[31].mxu0 }
 0x23b   : > { %4608 = vst [vmem:[%s6076_s14 + $0x68] sm:$0xff] %v4584_v28   ;;  %v3639_v37 = vadd.f32 %v5304_v30, %v6066_v49  ;;  %v5306_v38 = vadd.f32 %v3560_v36, %v2012_v32 }
 0x23c   : > { %4607 = vst [vmem:[%s6076_s14 + $0x60] sm:$0xff] %v4579_v33   ;;  %v3705_v39 = vmul.f32 0.2, %v3641_v34  ;;  %v3642_v40 = vadd.f32 %v5305_v35, %v6066_v49  ;;  %vm3673_vm12 = vcmp.ge.f32.partialorder %v3641_v34, 0.0 }
 0x23d   : > { %v3703_v48 = vmul.f32 0.2, %v3639_v37  ;;  %v3640_v41 = vadd.f32 %v5306_v38, %v6066_v49  ;;  %vm3671_vm13 = vcmp.ge.f32.partialorder %v3639_v37, 0.0 }
 0x23e   : > { %vm3674_vm14 = vcmp.ge.f32.partialorder %v3642_v40, 0.0  ;;  %v3706_v50 = vmul.f32 0.2, %v3642_v40  ;;  %v3737_v51 = vsel %vm3673_vm12, %v3641_v34, %v3705_v39 }
 0x23f   : > { %vm3672_vm15 = vcmp.ge.f32.partialorder %v3640_v41, 0.0  ;;  %v3704_v42 = vmul.f32 0.2, %v3640_v41  ;;  %v3735_v53 = vsel %vm3671_vm13, %v3639_v37, %v3703_v48 }
 0x240   : > { %v3738_v52 = vsel %vm3674_vm14, %v3642_v40, %v3706_v50 }
 0x241   : > { %v4594_v43 = vpack.c.bf16 %v3738_v52, %v3737_v51  ;;  %v3736_v54 = vsel %vm3672_vm15, %v3640_v41, %v3704_v42 }
 0x242   : > { %v4589_v55 = vpack.c.bf16 %v3736_v54, %v3735_v53 }
 0x243   : > { %4610 = vst [vmem:[%s6076_s14 + $0x78] sm:$0xff] %v4594_v43  }
 0x244   : > { %4609 = vst [vmem:[%s6076_s14 + $0x70] sm:$0xff] %v4589_v55  }
 0x245 PF: > { %s14_s12 = sadd.s32 1, %s5815_s12  }
 0x246   : > { %p11_p3 = scmp.ge.s32.totalorder %s14_s12, 4  }
 0x248   :  { %13 = sbr.rel (!%p11_p3) target bundleno = 1 (0x1), region = 83 }
 0x24f   :  { %3920 = vsyncpa [#allocation3], 1 }
 0x250   :  { %3922 = vsyncpa [#allocation3 + $0x1], 1 }

</bundles_post_ra>
